<compile_context>
chip_gen: v7x
topology: tpu7x:2x2x1
jax: 0.10.0
libtpu: 0.0.40
codegen_flags: <defaults>
</compile_context>

<pallas_src>
from collections import OrderedDict
import functools

import jax
import jax.numpy as jnp
import numpy as np
from jax.experimental import pallas as pl
from jax.experimental.pallas import tpu as pltpu

LEAKY_SLOPE = 0.2
LAMBDA_MOD_DISC = 1.0
LAMBDA_MOD_CYC = 1.0


def _loss_g_kernel(n_total,
                   x_sa, x_ta, x_sat, x_sats, x_tas, x_tast,
                   ws1, bs1, ws2, bs2, wt1, bt1, wt2, bt2,
                   out_ref, acc_ref):
    """Image blocks: (B, C, TILE_N) in their native dtype.
       ws1/wt1: (C, HID, 1); bs1/bt1, ws2/wt2: (1, HID, 1); bs2/bt2: (1, 1, 1).
       out_ref: (1, 4, B) f32 — one block per shard of the parallel axis.
       acc_ref: (4, B, TILE_N) f32 scratch of lane-dense partial sums, rows
                [gen_S, gen_T, rec_SATS, rec_TAST]."""
    t = pl.program_id(1)
    n_steps = pl.num_programs(1)

    @pl.when(t == 0)
    def _init():
        acc_ref[...] = jnp.zeros_like(acc_ref)

    def disc_sq_err(x_ref, w1, b1, w2, b2):
        # Synthetic 1x1-conv patch discriminator, evaluated on the VPU
        # (contraction dim C is 3-4: far too small for the MXU).
        x = x_ref[...].astype(jnp.float32)                 # (B, C, Tn)
        c_dim = x.shape[1]
        w1f = w1[...].astype(jnp.float32)                  # (C, HID, 1)
        z = None
        for c in range(c_dim):                             # C is tiny; unrolled
            term = x[:, c:c + 1, :] * w1f[c:c + 1, :, :]   # -> (B, HID, Tn)
            z = term if z is None else z + term
        z = z + b1[...].astype(jnp.float32)                # (1, HID, 1) bias
        h = jnp.where(z > 0, z, LEAKY_SLOPE * z)           # LeakyReLU(0.2)
        s = jnp.sum(h * w2[...].astype(jnp.float32), axis=1, keepdims=True)
        s = s + b2[...].astype(jnp.float32)                # (B, 1, Tn)
        d = s[:, 0, :] - 1.0                               # LSGAN: (D(fake)-1)^2
        return d * d                                       # (B, Tn) lane-dense

    def abs_diff_sum_c(a_ref, b_ref):
        a = a_ref[...].astype(jnp.float32)
        b = b_ref[...].astype(jnp.float32)
        return jnp.sum(jnp.abs(a - b), axis=1)             # (B, Tn)

    acc_ref[0, :, :] = acc_ref[0, :, :] + disc_sq_err(x_tas, ws1, bs1, ws2, bs2)
    acc_ref[1, :, :] = acc_ref[1, :, :] + disc_sq_err(x_sat, wt1, bt1, wt2, bt2)
    acc_ref[2, :, :] = acc_ref[2, :, :] + abs_diff_sum_c(x_sa, x_sats)
    acc_ref[3, :, :] = acc_ref[3, :, :] + abs_diff_sum_c(x_ta, x_tast)

    @pl.when(t == n_steps - 1)
    def _finalize():
        c_dim = x_sa.shape[1]
        sums = jnp.sum(acc_ref[...], axis=2)               # (4, B) cross-lane reduce, once
        inv_n = 1.0 / float(n_total)
        inv_nc = 1.0 / float(n_total * c_dim)
        # Python-scalar multipliers only (no captured constant arrays).
        out_ref[0, 0:2, :] = (sums[0:2, :] *
                              (LAMBDA_MOD_DISC * inv_n)).astype(out_ref.dtype)
        out_ref[0, 2:4, :] = (sums[2:4, :] *
                              (LAMBDA_MOD_CYC * inv_nc)).astype(out_ref.dtype)


def _choose_tiling(n_total, bytes_per_col, vmem_budget_bytes):
    """Pick (tile_n, inner_steps, shards) with n_total == shards*inner_steps*tile_n."""
    if n_total % 128 != 0:
        # TODO(synk): pad the spatial axis to a multiple of 128 instead of
        # falling back to a single whole-axis block.
        return n_total, 1, 1
    cap = (vmem_budget_bytes // max(bytes_per_col, 1)) // 128 * 128
    cap = max(128, min(cap, 2048))
    if n_total >= 256:
        # Keep at least two blocks so the leading (parallel) grid axis can be
        # split across TensorCores on multi-core chips.
        cap = min(cap, max(128, ((n_total // 2) // 128) * 128))
    tile = 128
    cand = 128
    while cand <= min(cap, n_total):
        if n_total % cand == 0:
            tile = cand
        cand += 128
    n_blocks = n_total // tile
    shards = 2 if n_blocks % 2 == 0 else 1
    return tile, n_blocks // shards, shards


def loss_G_forward(x_SA, x_TA, x_SAT, x_SATS, x_TAS, x_TAST, params):
    """params = (ws1, bs1, ws2, bs2, wt1, bt1, wt2, bt2) as 2-D arrays."""
    B, C, H, W = x_SA.shape
    N = H * W
    ws1, bs1, ws2, bs2, wt1, bt1, wt2, bt2 = params
    HID = ws1.shape[1]

    # NCHW -> (B, C, N): free reshape (no transpose, no dtype cast).
    imgs = [v.reshape(B, C, N)
            for v in (x_SA, x_TA, x_SAT, x_SATS, x_TAS, x_TAST)]

    # Weights re-laid so HID sits on the sublane axis the kernel broadcasts over
    # (tiny one-time reshapes; loaded into VMEM once thanks to constant index maps).
    wts = [ws1.reshape(C, HID, 1), bs1.reshape(1, HID, 1),
           ws2.reshape(1, HID, 1), bs2.reshape(1, 1, 1),
           wt1.reshape(C, HID, 1), bt1.reshape(1, HID, 1),
           wt2.reshape(1, HID, 1), bt2.reshape(1, 1, 1)]

    # VMEM sizing: 6 streamed inputs x 2 pipeline buffers x (B, C_pad, TILE_N).
    c_pad = ((C + 7) // 8) * 8
    bytes_per_col = 6 * 2 * B * c_pad * jnp.dtype(x_SA.dtype).itemsize
    tile_n, n_steps, n_shards = _choose_tiling(
        N, bytes_per_col, vmem_budget_bytes=20 * 1024 * 1024)

    img_spec = pl.BlockSpec((B, C, tile_n),
                            lambda p, t, _T=n_steps: (0, 0, p * _T + t))
    in_specs = [img_spec] * 6 + [
        pl.BlockSpec(w.shape, lambda p, t: (0, 0, 0)) for w in wts]
    out_spec = pl.BlockSpec((1, 4, B), lambda p, t: (p, 0, 0))

    out = pl.pallas_call(
        functools.partial(_loss_g_kernel, N),
        out_shape=jax.ShapeDtypeStruct((n_shards, 4, B), jnp.float32),
        grid=(n_shards, n_steps),
        in_specs=in_specs,
        out_specs=out_spec,
        scratch_shapes=[pltpu.VMEM((4, B, tile_n), jnp.float32)],
        compiler_params=pltpu.CompilerParams(
            dimension_semantics=("parallel", "arbitrary"),
            vmem_limit_bytes=48 * 1024 * 1024),
    )(*imgs, *wts)

    totals = jnp.sum(out, axis=0)                          # sum shard partials -> (4, B)
    l_gen_S, l_gen_T = totals[0], totals[1]
    l_rec_SATS, l_rec_TAST = totals[2], totals[3]
    l_rec_img = l_rec_SATS + l_rec_TAST                    # _reduce([rec_SATS, rec_TAST])
    l_G = l_gen_S + l_gen_T + l_rec_img                    # _reduce(gen) + _reduce(rec)
    return OrderedDict((('l_G', l_G),
                        ('l_gen_S', l_gen_S),
                        ('l_gen_T', l_gen_T),
                        ('l_rec_img', l_rec_img)))


def _reference(x_SA, x_TA, x_SAT, x_SATS, x_TAS, x_TAST, params):
    """Pure-JAX reference of the same math (for a correctness check)."""
    B, C, H, W = x_SA.shape
    ws1, bs1, ws2, bs2, wt1, bt1, wt2, bt2 = [p.astype(jnp.float32) for p in params]

    def to_bnc(x):
        return jnp.transpose(x, (0, 2, 3, 1)).reshape(B, H * W, C).astype(jnp.float32)

    def disc_g(x, w1, b1, w2, b2):
        z = jnp.einsum('bnc,ch->bnh', x, w1) + b1
        h = jnp.where(z > 0, z, LEAKY_SLOPE * z)
        s = jnp.einsum('bnh,ho->bno', h, w2) + b2
        return jnp.mean((s - 1.0) ** 2, axis=(1, 2))

    def mae(a, b):
        return jnp.mean(jnp.abs(a - b), axis=(1, 2))

    sa, ta, sat, sats, tas, tast = map(to_bnc, (x_SA, x_TA, x_SAT, x_SATS, x_TAS, x_TAST))
    l_gen_S = LAMBDA_MOD_DISC * disc_g(tas, ws1, bs1, ws2, bs2)
    l_gen_T = LAMBDA_MOD_DISC * disc_g(sat, wt1, bt1, wt2, bt2)
    l_rec = LAMBDA_MOD_CYC * mae(sa, sats) + LAMBDA_MOD_CYC * mae(ta, tast)
    return l_gen_S + l_gen_T + l_rec, l_gen_S, l_gen_T, l_rec


if __name__ == "__main__":
    B, C, H, W = 2, 4, 16, 16
    HID = 32

    key = jax.random.PRNGKey(0)
    ks = jax.random.split(key, 12)

    # six input images (x_SA, x_TA, x_SAT, x_SATS, x_TAS, x_TAST), NCHW
    imgs = [jax.random.normal(ks[i], (B, C, H, W), dtype=jnp.float32)
            for i in range(6)]

    # deterministic synthetic discriminator weights (disc_S, disc_T)
    ws1 = 0.1 * jax.random.normal(ks[6], (C, HID), dtype=jnp.float32)
    bs1 = jnp.zeros((1, HID), dtype=jnp.float32)
    ws2 = 0.1 * jax.random.normal(ks[7], (HID, 1), dtype=jnp.float32)
    bs2 = jnp.zeros((1, 1), dtype=jnp.float32)
    wt1 = 0.1 * jax.random.normal(ks[8], (C, HID), dtype=jnp.float32)
    bt1 = jnp.zeros((1, HID), dtype=jnp.float32)
    wt2 = 0.1 * jax.random.normal(ks[9], (HID, 1), dtype=jnp.float32)
    bt2 = jnp.zeros((1, 1), dtype=jnp.float32)
    params = (ws1, bs1, ws2, bs2, wt1, bt1, wt2, bt2)

    losses = loss_G_forward(*imgs, params)
    losses = jax.tree_util.tree_map(jax.block_until_ready, losses)

    ref_lG, ref_gS, ref_gT, ref_rec = _reference(*imgs, params)
    np.testing.assert_allclose(np.asarray(losses['l_G']), np.asarray(ref_lG),
                               rtol=1e-5, atol=1e-5)
    np.testing.assert_allclose(np.asarray(losses['l_gen_S']), np.asarray(ref_gS),
                               rtol=1e-5, atol=1e-5)
    np.testing.assert_allclose(np.asarray(losses['l_gen_T']), np.asarray(ref_gT),
                               rtol=1e-5, atol=1e-5)
    np.testing.assert_allclose(np.asarray(losses['l_rec_img']), np.asarray(ref_rec),
                               rtol=1e-5, atol=1e-5)

    print("KERNEL_OK")
</pallas_src>

<mosaic_0001>
module attributes {stable_mosaic.version = 11 : i64} {
  func.func @_loss_g_kernel(%arg0: i32, %arg1: i32, %arg2: memref<2x4x128xf32, #tpu.memory_space<vmem>>, %arg3: memref<2x4x128xf32, #tpu.memory_space<vmem>>, %arg4: memref<2x4x128xf32, #tpu.memory_space<vmem>>, %arg5: memref<2x4x128xf32, #tpu.memory_space<vmem>>, %arg6: memref<2x4x128xf32, #tpu.memory_space<vmem>>, %arg7: memref<2x4x128xf32, #tpu.memory_space<vmem>>, %arg8: memref<4x32x1xf32, #tpu.memory_space<vmem>>, %arg9: memref<1x32x1xf32, #tpu.memory_space<vmem>>, %arg10: memref<1x32x1xf32, #tpu.memory_space<vmem>>, %arg11: memref<1x1x1xf32, #tpu.memory_space<vmem>>, %arg12: memref<4x32x1xf32, #tpu.memory_space<vmem>>, %arg13: memref<1x32x1xf32, #tpu.memory_space<vmem>>, %arg14: memref<1x32x1xf32, #tpu.memory_space<vmem>>, %arg15: memref<1x1x1xf32, #tpu.memory_space<vmem>>, %arg16: memref<1x4x2xf32, #tpu.memory_space<vmem>>, %arg17: memref<4x2x128xf32, #tpu.memory_space<vmem>>) attributes {dimension_semantics = [#tpu.dimension_semantics<parallel>, #tpu.dimension_semantics<arbitrary>], iteration_bounds = array<i64: 2, 1>, scalar_prefetch = 0 : i64, scratch_operands = 1 : i64, tpu.core_type = #tpu.core_type<tc>, window_params = [{transform_indices = @transform_0, window_bounds = array<i64: 2, 4, 128>}, {transform_indices = @transform_1, window_bounds = array<i64: 2, 4, 128>}, {transform_indices = @transform_2, window_bounds = array<i64: 2, 4, 128>}, {transform_indices = @transform_3, window_bounds = array<i64: 2, 4, 128>}, {transform_indices = @transform_4, window_bounds = array<i64: 2, 4, 128>}, {transform_indices = @transform_5, window_bounds = array<i64: 2, 4, 128>}, {pipeline_mode = #tpu.pipeline_mode<synchronous>, transform_indices = @transform_6, window_bounds = array<i64: 4, 32, 1>}, {pipeline_mode = #tpu.pipeline_mode<synchronous>, transform_indices = @transform_7, window_bounds = array<i64: 1, 32, 1>}, {pipeline_mode = #tpu.pipeline_mode<synchronous>, transform_indices = @transform_8, window_bounds = array<i64: 1, 32, 1>}, {pipeline_mode = #tpu.pipeline_mode<synchronous>, transform_indices = @transform_9, window_bounds = array<i64: 1, 1, 1>}, {pipeline_mode = #tpu.pipeline_mode<synchronous>, transform_indices = @transform_10, window_bounds = array<i64: 4, 32, 1>}, {pipeline_mode = #tpu.pipeline_mode<synchronous>, transform_indices = @transform_11, window_bounds = array<i64: 1, 32, 1>}, {pipeline_mode = #tpu.pipeline_mode<synchronous>, transform_indices = @transform_12, window_bounds = array<i64: 1, 32, 1>}, {pipeline_mode = #tpu.pipeline_mode<synchronous>, transform_indices = @transform_13, window_bounds = array<i64: 1, 1, 1>}, {transform_indices = @transform_14, window_bounds = array<i64: 1, 4, 2>}]} {
    %c0_i32 = arith.constant 0 : i32
    %0 = arith.cmpi eq, %arg1, %c0_i32 : i32
    %1 = arith.extui %0 : i1 to i32
    %c0_i32_0 = arith.constant 0 : i32
    %2 = arith.cmpi ne, %1, %c0_i32_0 : i32
    scf.if %2 {
      %cst_74 = arith.constant 0.000000e+00 : f32
      %130 = vector.broadcast %cst_74 : f32 to vector<4x2x128xf32>
      %c0_75 = arith.constant 0 : index
      %c0_76 = arith.constant 0 : index
      %c0_77 = arith.constant 0 : index
      %131 = vector.load %arg17[%c0_75, %c0_76, %c0_77] : memref<4x2x128xf32, #tpu.memory_space<vmem>>, vector<4x2x128xf32>
      tpu.vector_store %arg17[%c0_75, %c0_76, %c0_77], %130 {strides = array<i32>} : memref<4x2x128xf32, #tpu.memory_space<vmem>>, vector<4x2x128xf32>,
    } else {
    }
    %c0 = arith.constant 0 : index
    %c0_1 = arith.constant 0 : index
    %c0_2 = arith.constant 0 : index
    %3 = vector.load %arg17[%c0, %c0_1, %c0_2] : memref<4x2x128xf32, #tpu.memory_space<vmem>>, vector<1x2x128xf32>
    %4 = vector.shape_cast %3 : vector<1x2x128xf32> to vector<2x128xf32>
    %c0_3 = arith.constant 0 : index
    %c0_4 = arith.constant 0 : index
    %c0_5 = arith.constant 0 : index
    %5 = vector.load %arg6[%c0_3, %c0_4, %c0_5] : memref<2x4x128xf32, #tpu.memory_space<vmem>>, vector<2x4x128xf32>
    %c0_6 = arith.constant 0 : index
    %c0_7 = arith.constant 0 : index
    %c0_8 = arith.constant 0 : index
    %6 = vector.load %arg8[%c0_6, %c0_7, %c0_8] : memref<4x32x1xf32, #tpu.memory_space<vmem>>, vector<4x32x1xf32>
    %7 = vector.extract_strided_slice %5 {offsets = [0, 0, 0], sizes = [2, 1, 128], strides = [1, 1, 1]} : vector<2x4x128xf32> to vector<2x1x128xf32>
    %8 = vector.extract_strided_slice %6 {offsets = [0, 0, 0], sizes = [1, 32, 1], strides = [1, 1, 1]} : vector<4x32x1xf32> to vector<1x32x1xf32>
    %9 = vector.broadcast %7 : vector<2x1x128xf32> to vector<2x32x128xf32>
    %10 = vector.broadcast %8 : vector<1x32x1xf32> to vector<2x32x128xf32>
    %11 = arith.mulf %9, %10 : vector<2x32x128xf32>
    %12 = vector.extract_strided_slice %5 {offsets = [0, 1, 0], sizes = [2, 1, 128], strides = [1, 1, 1]} : vector<2x4x128xf32> to vector<2x1x128xf32>
    %13 = vector.extract_strided_slice %6 {offsets = [1, 0, 0], sizes = [1, 32, 1], strides = [1, 1, 1]} : vector<4x32x1xf32> to vector<1x32x1xf32>
    %14 = vector.broadcast %12 : vector<2x1x128xf32> to vector<2x32x128xf32>
    %15 = vector.broadcast %13 : vector<1x32x1xf32> to vector<2x32x128xf32>
    %16 = arith.mulf %14, %15 : vector<2x32x128xf32>
    %17 = arith.addf %11, %16 : vector<2x32x128xf32>
    %18 = vector.extract_strided_slice %5 {offsets = [0, 2, 0], sizes = [2, 1, 128], strides = [1, 1, 1]} : vector<2x4x128xf32> to vector<2x1x128xf32>
    %19 = vector.extract_strided_slice %6 {offsets = [2, 0, 0], sizes = [1, 32, 1], strides = [1, 1, 1]} : vector<4x32x1xf32> to vector<1x32x1xf32>
    %20 = vector.broadcast %18 : vector<2x1x128xf32> to vector<2x32x128xf32>
    %21 = vector.broadcast %19 : vector<1x32x1xf32> to vector<2x32x128xf32>
    %22 = arith.mulf %20, %21 : vector<2x32x128xf32>
    %23 = arith.addf %17, %22 : vector<2x32x128xf32>
    %24 = vector.extract_strided_slice %5 {offsets = [0, 3, 0], sizes = [2, 1, 128], strides = [1, 1, 1]} : vector<2x4x128xf32> to vector<2x1x128xf32>
    %25 = vector.extract_strided_slice %6 {offsets = [3, 0, 0], sizes = [1, 32, 1], strides = [1, 1, 1]} : vector<4x32x1xf32> to vector<1x32x1xf32>
    %26 = vector.broadcast %24 : vector<2x1x128xf32> to vector<2x32x128xf32>
    %27 = vector.broadcast %25 : vector<1x32x1xf32> to vector<2x32x128xf32>
    %28 = arith.mulf %26, %27 : vector<2x32x128xf32>
    %29 = arith.addf %23, %28 : vector<2x32x128xf32>
    %c0_9 = arith.constant 0 : index
    %c0_10 = arith.constant 0 : index
    %c0_11 = arith.constant 0 : index
    %30 = vector.load %arg9[%c0_9, %c0_10, %c0_11] : memref<1x32x1xf32, #tpu.memory_space<vmem>>, vector<1x32x1xf32>
    %31 = vector.broadcast %30 : vector<1x32x1xf32> to vector<2x32x128xf32>
    %32 = arith.addf %29, %31 : vector<2x32x128xf32>
    %cst = arith.constant 0.000000e+00 : f32
    %33 = vector.broadcast %cst : f32 to vector<2x32x128xf32>
    %34 = arith.cmpf ogt, %32, %33 : vector<2x32x128xf32>
    %cst_12 = arith.constant 2.000000e-01 : f32
    %35 = vector.broadcast %cst_12 : f32 to vector<2x32x128xf32>
    %36 = arith.mulf %35, %32 : vector<2x32x128xf32>
    %37 = arith.select %34, %32, %36 : vector<2x32x128xi1>, vector<2x32x128xf32>
    %c0_13 = arith.constant 0 : index
    %c0_14 = arith.constant 0 : index
    %c0_15 = arith.constant 0 : index
    %38 = vector.load %arg10[%c0_13, %c0_14, %c0_15] : memref<1x32x1xf32, #tpu.memory_space<vmem>>, vector<1x32x1xf32>
    %39 = vector.broadcast %38 : vector<1x32x1xf32> to vector<2x32x128xf32>
    %40 = arith.mulf %37, %39 : vector<2x32x128xf32>
    %cst_16 = arith.constant dense<0.000000e+00> : vector<2x128xf32>
    %41 = vector.multi_reduction <add>, %40, %cst_16 [1] : vector<2x32x128xf32> to vector<2x128xf32>
    %42 = vector.shape_cast %41 : vector<2x128xf32> to vector<2x1x128xf32>
    %c0_17 = arith.constant 0 : index
    %c0_18 = arith.constant 0 : index
    %c0_19 = arith.constant 0 : index
    %43 = vector.load %arg11[%c0_17, %c0_18, %c0_19] : memref<1x1x1xf32, #tpu.memory_space<vmem>>, vector<1x1x1xf32>
    %44 = vector.broadcast %43 : vector<1x1x1xf32> to vector<2x1x128xf32>
    %45 = arith.addf %42, %44 : vector<2x1x128xf32>
    %46 = vector.shape_cast %45 : vector<2x1x128xf32> to vector<2x128xf32>
    %cst_20 = arith.constant 1.000000e+00 : f32
    %47 = vector.broadcast %cst_20 : f32 to vector<2x128xf32>
    %48 = arith.subf %46, %47 : vector<2x128xf32>
    %49 = arith.mulf %48, %48 : vector<2x128xf32>
    %50 = arith.addf %4, %49 : vector<2x128xf32>
    %c0_21 = arith.constant 0 : index
    %c0_22 = arith.constant 0 : index
    %c0_23 = arith.constant 0 : index
    %51 = vector.load %arg17[%c0_21, %c0_22, %c0_23] : memref<4x2x128xf32, #tpu.memory_space<vmem>>, vector<1x2x128xf32>
    %52 = vector.shape_cast %51 : vector<1x2x128xf32> to vector<2x128xf32>
    %53 = vector.shape_cast %50 : vector<2x128xf32> to vector<1x2x128xf32>
    tpu.vector_store %arg17[%c0_21, %c0_22, %c0_23], %53 {strides = array<i32>} : memref<4x2x128xf32, #tpu.memory_space<vmem>>, vector<1x2x128xf32>,
    %c1 = arith.constant 1 : index
    %c0_24 = arith.constant 0 : index
    %c0_25 = arith.constant 0 : index
    %54 = vector.load %arg17[%c1, %c0_24, %c0_25] : memref<4x2x128xf32, #tpu.memory_space<vmem>>, vector<1x2x128xf32>
    %55 = vector.shape_cast %54 : vector<1x2x128xf32> to vector<2x128xf32>
    %c0_26 = arith.constant 0 : index
    %c0_27 = arith.constant 0 : index
    %c0_28 = arith.constant 0 : index
    %56 = vector.load %arg4[%c0_26, %c0_27, %c0_28] : memref<2x4x128xf32, #tpu.memory_space<vmem>>, vector<2x4x128xf32>
    %c0_29 = arith.constant 0 : index
    %c0_30 = arith.constant 0 : index
    %c0_31 = arith.constant 0 : index
    %57 = vector.load %arg12[%c0_29, %c0_30, %c0_31] : memref<4x32x1xf32, #tpu.memory_space<vmem>>, vector<4x32x1xf32>
    %58 = vector.extract_strided_slice %56 {offsets = [0, 0, 0], sizes = [2, 1, 128], strides = [1, 1, 1]} : vector<2x4x128xf32> to vector<2x1x128xf32>
    %59 = vector.extract_strided_slice %57 {offsets = [0, 0, 0], sizes = [1, 32, 1], strides = [1, 1, 1]} : vector<4x32x1xf32> to vector<1x32x1xf32>
    %60 = vector.broadcast %58 : vector<2x1x128xf32> to vector<2x32x128xf32>
    %61 = vector.broadcast %59 : vector<1x32x1xf32> to vector<2x32x128xf32>
    %62 = arith.mulf %60, %61 : vector<2x32x128xf32>
    %63 = vector.extract_strided_slice %56 {offsets = [0, 1, 0], sizes = [2, 1, 128], strides = [1, 1, 1]} : vector<2x4x128xf32> to vector<2x1x128xf32>
    %64 = vector.extract_strided_slice %57 {offsets = [1, 0, 0], sizes = [1, 32, 1], strides = [1, 1, 1]} : vector<4x32x1xf32> to vector<1x32x1xf32>
    %65 = vector.broadcast %63 : vector<2x1x128xf32> to vector<2x32x128xf32>
    %66 = vector.broadcast %64 : vector<1x32x1xf32> to vector<2x32x128xf32>
    %67 = arith.mulf %65, %66 : vector<2x32x128xf32>
    %68 = arith.addf %62, %67 : vector<2x32x128xf32>
    %69 = vector.extract_strided_slice %56 {offsets = [0, 2, 0], sizes = [2, 1, 128], strides = [1, 1, 1]} : vector<2x4x128xf32> to vector<2x1x128xf32>
    %70 = vector.extract_strided_slice %57 {offsets = [2, 0, 0], sizes = [1, 32, 1], strides = [1, 1, 1]} : vector<4x32x1xf32> to vector<1x32x1xf32>
    %71 = vector.broadcast %69 : vector<2x1x128xf32> to vector<2x32x128xf32>
    %72 = vector.broadcast %70 : vector<1x32x1xf32> to vector<2x32x128xf32>
    %73 = arith.mulf %71, %72 : vector<2x32x128xf32>
    %74 = arith.addf %68, %73 : vector<2x32x128xf32>
    %75 = vector.extract_strided_slice %56 {offsets = [0, 3, 0], sizes = [2, 1, 128], strides = [1, 1, 1]} : vector<2x4x128xf32> to vector<2x1x128xf32>
    %76 = vector.extract_strided_slice %57 {offsets = [3, 0, 0], sizes = [1, 32, 1], strides = [1, 1, 1]} : vector<4x32x1xf32> to vector<1x32x1xf32>
    %77 = vector.broadcast %75 : vector<2x1x128xf32> to vector<2x32x128xf32>
    %78 = vector.broadcast %76 : vector<1x32x1xf32> to vector<2x32x128xf32>
    %79 = arith.mulf %77, %78 : vector<2x32x128xf32>
    %80 = arith.addf %74, %79 : vector<2x32x128xf32>
    %c0_32 = arith.constant 0 : index
    %c0_33 = arith.constant 0 : index
    %c0_34 = arith.constant 0 : index
    %81 = vector.load %arg13[%c0_32, %c0_33, %c0_34] : memref<1x32x1xf32, #tpu.memory_space<vmem>>, vector<1x32x1xf32>
    %82 = vector.broadcast %81 : vector<1x32x1xf32> to vector<2x32x128xf32>
    %83 = arith.addf %80, %82 : vector<2x32x128xf32>
    %cst_35 = arith.constant 0.000000e+00 : f32
    %84 = vector.broadcast %cst_35 : f32 to vector<2x32x128xf32>
    %85 = arith.cmpf ogt, %83, %84 : vector<2x32x128xf32>
    %cst_36 = arith.constant 2.000000e-01 : f32
    %86 = vector.broadcast %cst_36 : f32 to vector<2x32x128xf32>
    %87 = arith.mulf %86, %83 : vector<2x32x128xf32>
    %88 = arith.select %85, %83, %87 : vector<2x32x128xi1>, vector<2x32x128xf32>
    %c0_37 = arith.constant 0 : index
    %c0_38 = arith.constant 0 : index
    %c0_39 = arith.constant 0 : index
    %89 = vector.load %arg14[%c0_37, %c0_38, %c0_39] : memref<1x32x1xf32, #tpu.memory_space<vmem>>, vector<1x32x1xf32>
    %90 = vector.broadcast %89 : vector<1x32x1xf32> to vector<2x32x128xf32>
    %91 = arith.mulf %88, %90 : vector<2x32x128xf32>
    %cst_40 = arith.constant dense<0.000000e+00> : vector<2x128xf32>
    %92 = vector.multi_reduction <add>, %91, %cst_40 [1] : vector<2x32x128xf32> to vector<2x128xf32>
    %93 = vector.shape_cast %92 : vector<2x128xf32> to vector<2x1x128xf32>
    %c0_41 = arith.constant 0 : index
    %c0_42 = arith.constant 0 : index
    %c0_43 = arith.constant 0 : index
    %94 = vector.load %arg15[%c0_41, %c0_42, %c0_43] : memref<1x1x1xf32, #tpu.memory_space<vmem>>, vector<1x1x1xf32>
    %95 = vector.broadcast %94 : vector<1x1x1xf32> to vector<2x1x128xf32>
    %96 = arith.addf %93, %95 : vector<2x1x128xf32>
    %97 = vector.shape_cast %96 : vector<2x1x128xf32> to vector<2x128xf32>
    %cst_44 = arith.constant 1.000000e+00 : f32
    %98 = vector.broadcast %cst_44 : f32 to vector<2x128xf32>
    %99 = arith.subf %97, %98 : vector<2x128xf32>
    %100 = arith.mulf %99, %99 : vector<2x128xf32>
    %101 = arith.addf %55, %100 : vector<2x128xf32>
    %c1_45 = arith.constant 1 : index
    %c0_46 = arith.constant 0 : index
    %c0_47 = arith.constant 0 : index
    %102 = vector.load %arg17[%c1_45, %c0_46, %c0_47] : memref<4x2x128xf32, #tpu.memory_space<vmem>>, vector<1x2x128xf32>
    %103 = vector.shape_cast %102 : vector<1x2x128xf32> to vector<2x128xf32>
    %104 = vector.shape_cast %101 : vector<2x128xf32> to vector<1x2x128xf32>
    tpu.vector_store %arg17[%c1_45, %c0_46, %c0_47], %104 {strides = array<i32>} : memref<4x2x128xf32, #tpu.memory_space<vmem>>, vector<1x2x128xf32>,
    %c2 = arith.constant 2 : index
    %c0_48 = arith.constant 0 : index
    %c0_49 = arith.constant 0 : index
    %105 = vector.load %arg17[%c2, %c0_48, %c0_49] : memref<4x2x128xf32, #tpu.memory_space<vmem>>, vector<1x2x128xf32>
    %106 = vector.shape_cast %105 : vector<1x2x128xf32> to vector<2x128xf32>
    %c0_50 = arith.constant 0 : index
    %c0_51 = arith.constant 0 : index
    %c0_52 = arith.constant 0 : index
    %107 = vector.load %arg2[%c0_50, %c0_51, %c0_52] : memref<2x4x128xf32, #tpu.memory_space<vmem>>, vector<2x4x128xf32>
    %c0_53 = arith.constant 0 : index
    %c0_54 = arith.constant 0 : index
    %c0_55 = arith.constant 0 : index
    %108 = vector.load %arg5[%c0_53, %c0_54, %c0_55] : memref<2x4x128xf32, #tpu.memory_space<vmem>>, vector<2x4x128xf32>
    %109 = arith.subf %107, %108 : vector<2x4x128xf32>
    %110 = math.absf %109 : vector<2x4x128xf32>
    %cst_56 = arith.constant dense<0.000000e+00> : vector<2x128xf32>
    %111 = vector.multi_reduction <add>, %110, %cst_56 [1] : vector<2x4x128xf32> to vector<2x128xf32>
    %112 = arith.addf %106, %111 : vector<2x128xf32>
    %c2_57 = arith.constant 2 : index
    %c0_58 = arith.constant 0 : index
    %c0_59 = arith.constant 0 : index
    %113 = vector.load %arg17[%c2_57, %c0_58, %c0_59] : memref<4x2x128xf32, #tpu.memory_space<vmem>>, vector<1x2x128xf32>
    %114 = vector.shape_cast %113 : vector<1x2x128xf32> to vector<2x128xf32>
    %115 = vector.shape_cast %112 : vector<2x128xf32> to vector<1x2x128xf32>
    tpu.vector_store %arg17[%c2_57, %c0_58, %c0_59], %115 {strides = array<i32>} : memref<4x2x128xf32, #tpu.memory_space<vmem>>, vector<1x2x128xf32>,
    %c3 = arith.constant 3 : index
    %c0_60 = arith.constant 0 : index
    %c0_61 = arith.constant 0 : index
    %116 = vector.load %arg17[%c3, %c0_60, %c0_61] : memref<4x2x128xf32, #tpu.memory_space<vmem>>, vector<1x2x128xf32>
    %117 = vector.shape_cast %116 : vector<1x2x128xf32> to vector<2x128xf32>
    %c0_62 = arith.constant 0 : index
    %c0_63 = arith.constant 0 : index
    %c0_64 = arith.constant 0 : index
    %118 = vector.load %arg3[%c0_62, %c0_63, %c0_64] : memref<2x4x128xf32, #tpu.memory_space<vmem>>, vector<2x4x128xf32>
    %c0_65 = arith.constant 0 : index
    %c0_66 = arith.constant 0 : index
    %c0_67 = arith.constant 0 : index
    %119 = vector.load %arg7[%c0_65, %c0_66, %c0_67] : memref<2x4x128xf32, #tpu.memory_space<vmem>>, vector<2x4x128xf32>
    %120 = arith.subf %118, %119 : vector<2x4x128xf32>
    %121 = math.absf %120 : vector<2x4x128xf32>
    %cst_68 = arith.constant dense<0.000000e+00> : vector<2x128xf32>
    %122 = vector.multi_reduction <add>, %121, %cst_68 [1] : vector<2x4x128xf32> to vector<2x128xf32>
    %123 = arith.addf %117, %122 : vector<2x128xf32>
    %c3_69 = arith.constant 3 : index
    %c0_70 = arith.constant 0 : index
    %c0_71 = arith.constant 0 : index
    %124 = vector.load %arg17[%c3_69, %c0_70, %c0_71] : memref<4x2x128xf32, #tpu.memory_space<vmem>>, vector<1x2x128xf32>
    %125 = vector.shape_cast %124 : vector<1x2x128xf32> to vector<2x128xf32>
    %126 = vector.shape_cast %123 : vector<2x128xf32> to vector<1x2x128xf32>
    tpu.vector_store %arg17[%c3_69, %c0_70, %c0_71], %126 {strides = array<i32>} : memref<4x2x128xf32, #tpu.memory_space<vmem>>, vector<1x2x128xf32>,
    %c0_i32_72 = arith.constant 0 : i32
    %127 = arith.cmpi eq, %arg1, %c0_i32_72 : i32
    %128 = arith.extui %127 : i1 to i32
    %c0_i32_73 = arith.constant 0 : i32
    %129 = arith.cmpi ne, %128, %c0_i32_73 : i32
    scf.if %129 {
      %c0_74 = arith.constant 0 : index
      %c0_75 = arith.constant 0 : index
      %c0_76 = arith.constant 0 : index
      %130 = vector.load %arg17[%c0_74, %c0_75, %c0_76] : memref<4x2x128xf32, #tpu.memory_space<vmem>>, vector<4x2x128xf32>
      %cst_77 = arith.constant dense<0.000000e+00> : vector<4x2xf32>
      %131 = vector.multi_reduction <add>, %130, %cst_77 [2] : vector<4x2x128xf32> to vector<4x2xf32>
      %132 = vector.extract_strided_slice %131 {offsets = [0, 0], sizes = [2, 2], strides = [1, 1]} : vector<4x2xf32> to vector<2x2xf32>
      %cst_78 = arith.constant 3.906250e-03 : f32
      %133 = vector.broadcast %cst_78 : f32 to vector<2x2xf32>
      %134 = arith.mulf %132, %133 : vector<2x2xf32>
      %c0_79 = arith.constant 0 : index
      %c0_80 = arith.constant 0 : index
      %c0_81 = arith.constant 0 : index
      %135 = vector.load %arg16[%c0_79, %c0_80, %c0_81] : memref<1x4x2xf32, #tpu.memory_space<vmem>>, vector<1x2x2xf32>
      %136 = vector.shape_cast %135 : vector<1x2x2xf32> to vector<2x2xf32>
      %137 = vector.shape_cast %134 : vector<2x2xf32> to vector<1x2x2xf32>
      tpu.vector_store %arg16[%c0_79, %c0_80, %c0_81], %137 {strides = array<i32>} : memref<1x4x2xf32, #tpu.memory_space<vmem>>, vector<1x2x2xf32>,
      %138 = vector.extract_strided_slice %131 {offsets = [2, 0], sizes = [2, 2], strides = [1, 1]} : vector<4x2xf32> to vector<2x2xf32>
      %cst_82 = arith.constant 9.765625E-4 : f32
      %139 = vector.broadcast %cst_82 : f32 to vector<2x2xf32>
      %140 = arith.mulf %138, %139 : vector<2x2xf32>
      %c0_83 = arith.constant 0 : index
      %c2_84 = arith.constant 2 : index
      %c0_85 = arith.constant 0 : index
      %141 = vector.load %arg16[%c0_83, %c2_84, %c0_85] : memref<1x4x2xf32, #tpu.memory_space<vmem>>, vector<1x2x2xf32>
      %142 = vector.shape_cast %141 : vector<1x2x2xf32> to vector<2x2xf32>
      %143 = vector.shape_cast %140 : vector<2x2xf32> to vector<1x2x2xf32>
      tpu.vector_store %arg16[%c0_83, %c2_84, %c0_85], %143 {strides = array<i32>} : memref<1x4x2xf32, #tpu.memory_space<vmem>>, vector<1x2x2xf32>,
    } else {
    }
    return
  }
  func.func @transform_0(%arg0: i32, %arg1: i32) -> (i32, i32, i32) {
    %c1_i32 = arith.constant 1 : i32
    %0 = arith.muli %arg0, %c1_i32 : i32
    %1 = arith.addi %0, %arg1 : i32
    %c0_i32 = arith.constant 0 : i32
    %c0_i32_0 = arith.constant 0 : i32
    %c0_i32_1 = arith.constant 0 : i32
    return %c0_i32, %c0_i32_0, %1 : i32, i32, i32
  }
  func.func @transform_1(%arg0: i32, %arg1: i32) -> (i32, i32, i32) {
    %c1_i32 = arith.constant 1 : i32
    %0 = arith.muli %arg0, %c1_i32 : i32
    %1 = arith.addi %0, %arg1 : i32
    %c0_i32 = arith.constant 0 : i32
    %c0_i32_0 = arith.constant 0 : i32
    %c0_i32_1 = arith.constant 0 : i32
    return %c0_i32, %c0_i32_0, %1 : i32, i32, i32
  }
  func.func @transform_2(%arg0: i32, %arg1: i32) -> (i32, i32, i32) {
    %c1_i32 = arith.constant 1 : i32
    %0 = arith.muli %arg0, %c1_i32 : i32
    %1 = arith.addi %0, %arg1 : i32
    %c0_i32 = arith.constant 0 : i32
    %c0_i32_0 = arith.constant 0 : i32
    %c0_i32_1 = arith.constant 0 : i32
    return %c0_i32, %c0_i32_0, %1 : i32, i32, i32
  }
  func.func @transform_3(%arg0: i32, %arg1: i32) -> (i32, i32, i32) {
    %c1_i32 = arith.constant 1 : i32
    %0 = arith.muli %arg0, %c1_i32 : i32
    %1 = arith.addi %0, %arg1 : i32
    %c0_i32 = arith.constant 0 : i32
    %c0_i32_0 = arith.constant 0 : i32
    %c0_i32_1 = arith.constant 0 : i32
    return %c0_i32, %c0_i32_0, %1 : i32, i32, i32
  }
  func.func @transform_4(%arg0: i32, %arg1: i32) -> (i32, i32, i32) {
    %c1_i32 = arith.constant 1 : i32
    %0 = arith.muli %arg0, %c1_i32 : i32
    %1 = arith.addi %0, %arg1 : i32
    %c0_i32 = arith.constant 0 : i32
    %c0_i32_0 = arith.constant 0 : i32
    %c0_i32_1 = arith.constant 0 : i32
    return %c0_i32, %c0_i32_0, %1 : i32, i32, i32
  }
  func.func @transform_5(%arg0: i32, %arg1: i32) -> (i32, i32, i32) {
    %c1_i32 = arith.constant 1 : i32
    %0 = arith.muli %arg0, %c1_i32 : i32
    %1 = arith.addi %0, %arg1 : i32
    %c0_i32 = arith.constant 0 : i32
    %c0_i32_0 = arith.constant 0 : i32
    %c0_i32_1 = arith.constant 0 : i32
    return %c0_i32, %c0_i32_0, %1 : i32, i32, i32
  }
  func.func @transform_6(%arg0: i32, %arg1: i32) -> (i32, i32, i32) {
    %c0_i32 = arith.constant 0 : i32
    %c0_i32_0 = arith.constant 0 : i32
    %c0_i32_1 = arith.constant 0 : i32
    %c0_i32_2 = arith.constant 0 : i32
    return %c0_i32, %c0_i32_0, %c0_i32_1 : i32, i32, i32
  }
  func.func @transform_7(%arg0: i32, %arg1: i32) -> (i32, i32, i32) {
    %c0_i32 = arith.constant 0 : i32
    %c0_i32_0 = arith.constant 0 : i32
    %c0_i32_1 = arith.constant 0 : i32
    %c0_i32_2 = arith.constant 0 : i32
    return %c0_i32, %c0_i32_0, %c0_i32_1 : i32, i32, i32
  }
  func.func @transform_8(%arg0: i32, %arg1: i32) -> (i32, i32, i32) {
    %c0_i32 = arith.constant 0 : i32
    %c0_i32_0 = arith.constant 0 : i32
    %c0_i32_1 = arith.constant 0 : i32
    %c0_i32_2 = arith.constant 0 : i32
    return %c0_i32, %c0_i32_0, %c0_i32_1 : i32, i32, i32
  }
  func.func @transform_9(%arg0: i32, %arg1: i32) -> (i32, i32, i32) {
    %c0_i32 = arith.constant 0 : i32
    %c0_i32_0 = arith.constant 0 : i32
    %c0_i32_1 = arith.constant 0 : i32
    %c0_i32_2 = arith.constant 0 : i32
    return %c0_i32, %c0_i32_0, %c0_i32_1 : i32, i32, i32
  }
  func.func @transform_10(%arg0: i32, %arg1: i32) -> (i32, i32, i32) {
    %c0_i32 = arith.constant 0 : i32
    %c0_i32_0 = arith.constant 0 : i32
    %c0_i32_1 = arith.constant 0 : i32
    %c0_i32_2 = arith.constant 0 : i32
    return %c0_i32, %c0_i32_0, %c0_i32_1 : i32, i32, i32
  }
  func.func @transform_11(%arg0: i32, %arg1: i32) -> (i32, i32, i32) {
    %c0_i32 = arith.constant 0 : i32
    %c0_i32_0 = arith.constant 0 : i32
    %c0_i32_1 = arith.constant 0 : i32
    %c0_i32_2 = arith.constant 0 : i32
    return %c0_i32, %c0_i32_0, %c0_i32_1 : i32, i32, i32
  }
  func.func @transform_12(%arg0: i32, %arg1: i32) -> (i32, i32, i32) {
    %c0_i32 = arith.constant 0 : i32
    %c0_i32_0 = arith.constant 0 : i32
    %c0_i32_1 = arith.constant 0 : i32
    %c0_i32_2 = arith.constant 0 : i32
    return %c0_i32, %c0_i32_0, %c0_i32_1 : i32, i32, i32
  }
  func.func @transform_13(%arg0: i32, %arg1: i32) -> (i32, i32, i32) {
    %c0_i32 = arith.constant 0 : i32
    %c0_i32_0 = arith.constant 0 : i32
    %c0_i32_1 = arith.constant 0 : i32
    %c0_i32_2 = arith.constant 0 : i32
    return %c0_i32, %c0_i32_0, %c0_i32_1 : i32, i32, i32
  }
  func.func @transform_14(%arg0: i32, %arg1: i32) -> (i32, i32, i32) {
    %c0_i32 = arith.constant 0 : i32
    %c0_i32_0 = arith.constant 0 : i32
    %c0_i32_1 = arith.constant 0 : i32
    return %arg0, %c0_i32, %c0_i32_0 : i32, i32, i32
  }
}

</mosaic_0001>

<bundles_post_ra>
// kernel: tpu_custom_call.1
= control target key start
LH: loop header
LB: loop body
LE: loop exit
PB: predicated region body
PF: predicated region fallthrough
CT: control target
= control target key end

     0   :  { %s2371_s0 = inlined_call_operand.vmem [shape: f32[2,4,256], index: 0, kind: input, shape index: {}]   ;;  %s2372_s1 = inlined_call_operand.vmem [shape: f32[2,4,256], index: 1, kind: input, shape index: {}]   ;;  %s2373_s2 = inlined_call_operand.vmem [shape: f32[2,4,256], index: 2, kind: input, shape index: {}]   ;;  %s2374_s3 = inlined_call_operand.vmem [shape: f32[2,4,256], index: 3, kind: input, shape index: {}]   ;;  %s2375_s4 = inlined_call_operand.vmem [shape: f32[2,4,256], index: 4, kind: input, shape index: {}]   ;;  %s2376_s5 = inlined_call_operand.vmem [shape: f32[2,4,256], index: 5, kind: input, shape index: {}]   ;;  %s2377_s6 = inlined_call_operand.vmem [shape: f32[4,32,1], index: 6, kind: input, shape index: {}]   ;;  %s2378_s7 = inlined_call_operand.vmem [shape: f32[1,32,1], index: 7, kind: input, shape index: {}]   ;;  %s2379_s8 = inlined_call_operand.vmem [shape: f32[1,32,1], index: 8, kind: input, shape index: {}]   ;;  %s2380_s9 = inlined_call_operand.<no memory space> [shape: f32[1,1,1], index: 9, kind: input, shape index: {}]   ;;  %s2381_s10 = inlined_call_operand.vmem [shape: f32[4,32,1], index: 10, kind: input, shape index: {}]   ;;  %s2382_s11 = inlined_call_operand.vmem [shape: f32[1,32,1], index: 11, kind: input, shape index: {}]   ;;  %s2383_s12 = inlined_call_operand.vmem [shape: f32[1,32,1], index: 12, kind: input, shape index: {}]   ;;  %s2384_s14 = inlined_call_operand.vmem [shape: f32[2,4,2], index: 14, kind: output, shape index: {}]   ;;  %s2385_s13 = inlined_call_operand.<no memory space> [shape: f32[1,1,1], index: 13, kind: input, shape index: {}]  }
   0x1   :  { %v19_v0 = vstv %s2380_s9  ;;  %v21_v1 = vstv %s2385_s13 }
   0x2   :  { %20 = vst [vmem:[#allocation3] sm:$0x1] %v19_v0  ;;  %22 = vst [vmem:[#allocation4] sm:$0x1] %v21_v1 }
   0x3   :  { %s1990_s17 = smov 0   ;;  %s1992_s18 = smov 0  }
   0x4   :  { %s1994_s19 = smov 0   ;;  %s1996_s20 = smov 0  }
   0x5   :  { %s1998_s21 = smov 0  }
   0x6 LB: > { %s40_s9 = sadd.s32 1, %s1901_s20  ;;  %p56_p1 = scmp.ne.s32.totalorder %s1893_s18, %s1889_s17  ;;  %s1905_s21 = sphi %s1998_s21, %s28_s21   ;;  %s1901_s20 = sphi %s1996_s20, %s2395_s20   ;;  %s1897_s19 = sphi %s1994_s19, %s2394_s19   ;;  %s1893_s18 = sphi %s1992_s18, %s2393_s18   ;;  %s1889_s17 = sphi %s1990_s17, %s2392_s17  }
   0x7   : > { %p42_p0 = scmp.ge.s32.totalorder %s40_s9, 2  ;;  %p57_p2 = scmp.eq.s32.totalorder %s1905_s21, 0 }
   0x8   : > { %s49_s23 = sadd.s32 1, %s1893_s18  ;;  %p1796_p5 = scmp.ge.s32.totalorder %s1905_s21, 2 }
   0x9   : > { %s2397_s9 = smov (%p42_p0, %s40_s9), 0  ;;  %p2021_p3 = por %p57_p2, %p56_p1 }
   0xa   : > { %2387 = sst [smem:[#allocation11_spill]] %s2397_s9  ;;  %s46_s22 = ssub.s32 %s1901_s20, %s2397_s9 }
   0xb   : > { %p47_p4 = scmp.eq.s32.totalorder %s46_s22, 0  ;;  %440 = sbr.rel (%p1796_p5) target bundleno = 60 (0x3c), region = 48 }
   0xd   : > { %s2029_s24 = scalar_select %p47_p4, %s1893_s18, %s49_s23  }
   0xf   : > { %2389 = sst [smem:[#allocation12_spill]] %s2029_s24 }
  0x12   : > { %443 = sbr.rel (!%p2021_p3) target bundleno = 25 (0x19), region = 52  ;;  %s445_s25 = sand.u32 (%p2021_p3), 1, %s1893_s18  }
  0x13   : > { %s1798_s26 = sshll.u32 (%p2021_p3), %s1901_s20, 2  ;;  %s1797_s27 = sshll.u32 (%p2021_p3), %s445_s25, 3 }
  0x14   : > { %s450_s30 = scalar_lea.vmem (%p2021_p3), %s2371_s0, %s1798_s26  ;;  %s447_s15 = scalar_lea.vmem (%p2021_p3), [#allocation5], %s1797_s27 }
  0x15   : > { %v466_v2 = vld [vmem:[%s450_s30] sm:$0xf] (%p2021_p3)  ;;  %v468_v3 = vld [vmem:[%s450_s30 + $0x8] sm:$0xf] (%p2021_p3) }
  0x16   : > { %467 = vst [vmem:[%s447_s15] sm:$0xf] (%p2021_p3), %v466_v2  ;;  %469 = vst [vmem:[%s447_s15 + $0x4] sm:$0xf] (%p2021_p3), %v468_v3 }
  0x19 PF: > { %496 = sbr.rel (!%p2021_p3) target bundleno = 32 (0x20), region = 93  ;;  %s498_s16 = sand.u32 (%p2021_p3), 1, %s1893_s18  }
  0x1a   : > { %s1800_s22 = sshll.u32 (%p2021_p3), %s1901_s20, 2  ;;  %s1799_s23 = sshll.u32 (%p2021_p3), %s498_s16, 3 }
  0x1b   : > { %s503_s24 = scalar_lea.vmem (%p2021_p3), %s2372_s1, %s1800_s22  ;;  %s500_s26 = scalar_lea.vmem (%p2021_p3), [#allocation6], %s1799_s23 }
  0x1c   : > { %v519_v4 = vld [vmem:[%s503_s24] sm:$0xf] (%p2021_p3)  ;;  %v521_v5 = vld [vmem:[%s503_s24 + $0x8] sm:$0xf] (%p2021_p3) }
  0x1d   : > { %520 = vst [vmem:[%s500_s26] sm:$0xf] (%p2021_p3), %v519_v4  ;;  %522 = vst [vmem:[%s500_s26 + $0x4] sm:$0xf] (%p2021_p3), %v521_v5 }
  0x20 PF: > { %549 = sbr.rel (!%p2021_p3) target bundleno = 39 (0x27), region = 134  ;;  %s551_s27 = sand.u32 (%p2021_p3), 1, %s1893_s18  }
  0x21   : > { %s1802_s28 = sshll.u32 (%p2021_p3), %s1901_s20, 2  ;;  %s1801_s29 = sshll.u32 (%p2021_p3), %s551_s27, 3 }
  0x22   : > { %s556_s16 = scalar_lea.vmem (%p2021_p3), %s2373_s2, %s1802_s28  ;;  %s553_s9 = scalar_lea.vmem (%p2021_p3), [#allocation7], %s1801_s29 }
  0x23   : > { %v572_v6 = vld [vmem:[%s556_s16] sm:$0xf] (%p2021_p3)  ;;  %v574_v7 = vld [vmem:[%s556_s16 + $0x8] sm:$0xf] (%p2021_p3) }
  0x24   : > { %573 = vst [vmem:[%s553_s9] sm:$0xf] (%p2021_p3), %v572_v6  ;;  %575 = vst [vmem:[%s553_s9 + $0x4] sm:$0xf] (%p2021_p3), %v574_v7 }
  0x27 PF: > { %602 = sbr.rel (!%p2021_p3) target bundleno = 46 (0x2e), region = 175  ;;  %s604_s24 = sand.u32 (%p2021_p3), 1, %s1893_s18  }
  0x28   : > { %s1804_s22 = sshll.u32 (%p2021_p3), %s1901_s20, 2  ;;  %s1803_s23 = sshll.u32 (%p2021_p3), %s604_s24, 3 }
  0x29   : > { %s609_s27 = scalar_lea.vmem (%p2021_p3), %s2374_s3, %s1804_s22  ;;  %s606_s28 = scalar_lea.vmem (%p2021_p3), [#allocation8], %s1803_s23 }
  0x2a   : > { %v625_v8 = vld [vmem:[%s609_s27] sm:$0xf] (%p2021_p3)  ;;  %v627_v9 = vld [vmem:[%s609_s27 + $0x8] sm:$0xf] (%p2021_p3) }
  0x2b   : > { %626 = vst [vmem:[%s606_s28] sm:$0xf] (%p2021_p3), %v625_v8  ;;  %628 = vst [vmem:[%s606_s28 + $0x4] sm:$0xf] (%p2021_p3), %v627_v9 }
  0x2e PF: > { %655 = sbr.rel (!%p2021_p3) target bundleno = 53 (0x35), region = 216  ;;  %s657_s29 = sand.u32 (%p2021_p3), 1, %s1893_s18  }
  0x2f   : > { %s1806_s30 = sshll.u32 (%p2021_p3), %s1901_s20, 2  ;;  %s1805_s15 = sshll.u32 (%p2021_p3), %s657_s29, 3 }
  0x30   : > { %s662_s24 = scalar_lea.vmem (%p2021_p3), %s2375_s4, %s1806_s30  ;;  %s659_s22 = scalar_lea.vmem (%p2021_p3), [#allocation9], %s1805_s15 }
  0x31   : > { %v678_v10 = vld [vmem:[%s662_s24] sm:$0xf] (%p2021_p3)  ;;  %v680_v11 = vld [vmem:[%s662_s24 + $0x8] sm:$0xf] (%p2021_p3) }
  0x32   : > { %679 = vst [vmem:[%s659_s22] sm:$0xf] (%p2021_p3), %v678_v10  ;;  %681 = vst [vmem:[%s659_s22 + $0x4] sm:$0xf] (%p2021_p3), %v680_v11 }
  0x35 PF: > { %708 = sbr.rel (!%p2021_p3) target bundleno = 60 (0x3c), region = 257  ;;  %s710_s23 = sand.u32 (%p2021_p3), 1, %s1893_s18  }
  0x36   : > { %s1808_s25 = sshll.u32 (%p2021_p3), %s1901_s20, 2  ;;  %s1807_s26 = sshll.u32 (%p2021_p3), %s710_s23, 3 }
  0x37   : > { %s715_s29 = scalar_lea.vmem (%p2021_p3), %s2376_s5, %s1808_s25  ;;  %s712_s30 = scalar_lea.vmem (%p2021_p3), [#allocation10], %s1807_s26 }
  0x38   : > { %v731_v12 = vld [vmem:[%s715_s29] sm:$0xf] (%p2021_p3)  ;;  %v733_v13 = vld [vmem:[%s715_s29 + $0x8] sm:$0xf] (%p2021_p3) }
  0x39   : > { %732 = vst [vmem:[%s712_s30] sm:$0xf] (%p2021_p3), %v731_v12  ;;  %734 = vst [vmem:[%s712_s30 + $0x4] sm:$0xf] (%p2021_p3), %v733_v13 }
  0x3c PF: > { %p1809_p6 = scmp.ge.s32.totalorder %s1905_s21, 1  ;;  %p760_p7 = scmp.lt.s32.totalorder %s1905_s21, 3 }
  0x3e   : > { %p761_p8 = pnand %p1809_p6, %p760_p7 }
  0x3f   : > { %v889_v14 = vld [vmem:[%s2377_s6 + $0x10] sm:$0xff] (!%p761_p8)  ;;  %v887_v15 = vld [vmem:[%s2377_s6] sm:$0xff] (!%p761_p8)  ;;  %v1907_v16 = vmov (!%p761_p8), 0   ;;  %v890_v17 = vld [vmem:[%s2377_s6 + $0x18] sm:$0xff] (!%p761_p8)  ;;  %s767_s22 = sand.u32 (!%p761_p8), 1, %s1889_s17   ;;  %v1908_v11 = vmov (!%p761_p8), 0.0  }
  0x40   : > { %764 = sbr.rel (%p761_p8) target bundleno = 475 (0x1db), region = 298  ;;  %1866 = vset.pattern.permute.xlu1 (!%p761_p8), %v1907_v16  ;;  %1865 = vset.pattern.permute.xlu0 (!%p761_p8), %v1907_v16  ;;  %v888_v18 = vld [vmem:[%s2377_s6 + $0x8] sm:$0xff] (!%p761_p8)  ;;  %v891_v20 = vld [vmem:[%s2377_s6 + $0x20] sm:$0xff] (!%p761_p8)  ;;  %v894_v21 = vld [vmem:[%s2377_s6 + $0x38] sm:$0xff] (!%p761_p8)  ;;  %s2221_s23 = sshll.u32 (!%p761_p8), %s767_s22, 3  ;;  %vm1526_vm0 = vcmask (!%p761_p8), 1043456  }
  0x41   : > { %923 = vperm.xlu1 (!%p761_p8), %1866, %v889_v14   ;;  %913 = vperm.xlu0 (!%p761_p8), %1865, %v887_v15   ;;  %v892_v19 = vld [vmem:[%s2377_s6 + $0x28] sm:$0xff] (!%p761_p8)  ;;  %v893_v22 = vld [vmem:[%s2377_s6 + $0x30] sm:$0xff] (!%p761_p8)  ;;  %v1204_v24 = vld [vmem:[%s2381_s10] sm:$0xff] (!%p761_p8)  ;;  %s769_s25 = scalar_lea.vmem (!%p761_p8), [#allocation5], %s2221_s23  ;;  %s790_s26 = scalar_lea.vmem (!%p761_p8), [#allocation8], %s2221_s23  ;;  %vm1195_vm1 = vcmask (!%p761_p8), 1041409  }
  0x42   : > { %v1205_v23 = vld [vmem:[%s2381_s10 + $0x8] sm:$0xff] (!%p761_p8)  ;;  %v1208_v26 = vld [vmem:[%s2381_s10 + $0x20] sm:$0xff] (!%p761_p8)  ;;  %v1210_v29 = vld [vmem:[%s2381_s10 + $0x30] sm:$0xff] (!%p761_p8)  ;;  %s776_s17 = scalar_lea.vmem (!%p761_p8), [#allocation6], %s2221_s23  ;;  %s804_s27 = scalar_lea.vmem (!%p761_p8), [#allocation10], %s2221_s23 }
  0x43   : > { %v1209_v25 = vld [vmem:[%s2381_s10 + $0x28] sm:$0xff] (!%p761_p8)  ;;  %v895_v28 = vld [vmem:[%s2377_s6 + $0x40] sm:$0xff] (!%p761_p8)  ;;  %v1206_v30 = vld [vmem:[%s2381_s10 + $0x10] sm:$0xff] (!%p761_p8)  ;;  %881 = vst [vmem:[#allocation2 + $0x2] sm:$0x3] (!%p761_p8), %v1908_v11  ;;  %s797_s28 = scalar_lea.vmem (!%p761_p8), [#allocation9], %s2221_s23 }
  0x44   : > { %v896_v27 = vld [vmem:[%s2377_s6 + $0x48] sm:$0xff] (!%p761_p8)  ;;  %v1212_v32 = vld [vmem:[%s2381_s10 + $0x40] sm:$0xff] (!%p761_p8)  ;;  %v897_v34 = vld [vmem:[%s2377_s6 + $0x50] sm:$0xff] (!%p761_p8)  ;;  %882 = vst [vmem:[#allocation2 + $0x4] sm:$0x3] (!%p761_p8), %v1908_v11  ;;  %s783_s29 = scalar_lea.vmem (!%p761_p8), [#allocation7], %s2221_s23 }
  0x45   : > { %928 = vperm.xlu1 (!%p761_p8), %1866, %v890_v17   ;;  %918 = vperm.xlu0 (!%p761_p8), %1865, %v888_v18   ;;  %v1213_v31 = vld [vmem:[%s2381_s10 + $0x48] sm:$0xff] (!%p761_p8)  ;;  %v899_v33 = vld [vmem:[%s2377_s6 + $0x60] sm:$0xff] (!%p761_p8)  ;;  %v1207_v35 = vld [vmem:[%s2381_s10 + $0x18] sm:$0xff] (!%p761_p8)  ;;  %883 = vst [vmem:[#allocation2 + $0x6] sm:$0x3] (!%p761_p8), %v1908_v11  ;;  %p872_p9 = scmp.lt.s32.totalorder (!%p761_p8), %s1897_s19, 1 }
  0x46   : > { %v900_v36 = vld [vmem:[%s2377_s6 + $0x68] sm:$0xff] (!%p761_p8)  ;;  %v1214_v37 = vld [vmem:[%s2381_s10 + $0x50] sm:$0xff] (!%p761_p8)  ;;  %v1211_v38 = vld [vmem:[%s2381_s10 + $0x38] sm:$0xff] (!%p761_p8)  ;;  %880 = vst [vmem:[#allocation2] sm:$0x3] (!%p761_p8), %v1908_v11 }
  0x47   : > { %v1217_v39 = vld [vmem:[%s2381_s10 + $0x68] sm:$0xff]  ;;  %v1216_v40 = vld [vmem:[%s2381_s10 + $0x60] sm:$0xff]  ;;  %v901_v41 = vld [vmem:[%s2377_s6 + $0x70] sm:$0xff]  ;;  %s2399_s19 = smov (!%p872_p9, %s1897_s19), 1 }
  0x48   : > { %v898_v42 = vld [vmem:[%s2377_s6 + $0x58] sm:$0xff]  ;;  %v1218_v43 = vld [vmem:[%s2381_s10 + $0x70] sm:$0xff]  ;;  %v1071_v45 = vld [vmem:[%s2378_s7] sm:$0xff]  ;;  %s1816_s30 = sshll.u32 %s2399_s19, 2 }
  0x49   : > { %954 = vperm.xlu1 %1866, %v892_v19   ;;  %949 = vperm.xlu0 %1865, %v891_v20   ;;  %v1215_v44 = vld [vmem:[%s2381_s10 + $0x58] sm:$0xff]  ;;  %v1072_v48 = vld [vmem:[%s2378_s7 + $0x8] sm:$0xff]  ;;  %v1388_v50 = vld [vmem:[%s2382_s11] sm:$0xff]  ;;  %s875_s16 = scalar_lea.vmem %s2384_s14, %s1816_s30 }
  0x4a   : > { %v902_v46 = vld [vmem:[%s2377_s6 + $0x78] sm:$0xff]  ;;  %v1389_v49 = vld [vmem:[%s2382_s11 + $0x8] sm:$0xff]  ;;  %v1390_v51 = vld [vmem:[%s2382_s11 + $0x10] sm:$0xff] }
  0x4b   : > { %v1219_v47 = vld [vmem:[%s2381_s10 + $0x78] sm:$0xff]  ;;  %v1073_v52 = vld [vmem:[%s2378_s7 + $0x10] sm:$0xff]  ;;  %v1128_v55 = vld [vmem:[%s2379_s8 + $0x8] sm:$0xff] }
  0x4c   : > { %v1391_v53 = vld [vmem:[%s2382_s11 + $0x18] sm:$0xff]  ;;  %v1127_v56 = vld [vmem:[%s2379_s8] sm:$0xff]  ;;  %v1445_v57 = vld [vmem:[%s2383_s12 + $0x8] sm:$0xff] }
  0x4d   : > { %964 = vperm.xlu1 %1866, %v894_v21   ;;  %959 = vperm.xlu0 %1865, %v893_v22   ;;  %v1074_v54 = vld [vmem:[%s2378_s7 + $0x18] sm:$0xff]  ;;  %v1444_v58 = vld [vmem:[%s2383_s12] sm:$0xff]  ;;  %v1446_v59 = vld [vmem:[%s2383_s12 + $0x10] sm:$0xff] }
  0x4e   : > { %v1129_v60 = vld [vmem:[%s2379_s8 + $0x10] sm:$0xff]  ;;  %v1447_v61 = vld [vmem:[%s2383_s12 + $0x18] sm:$0xff]  ;;  %v1494_v63 = vld [vmem:[#allocation4] sm:$0x1] }
  0x4f   : > { %v1130_v62 = vld [vmem:[%s2379_s8 + $0x18] sm:$0xff]  ;;  %v1177_v0 = vld [vmem:[#allocation3] sm:$0x1]  ;;  %v1518_v1 = vld [vmem:[%s769_s25] sm:$0xf] }
  0x50   : > { %v1519_v2 = vld [vmem:[%s769_s25 + $0x4] sm:$0xf]  ;;  %v1520_v3 = vld [vmem:[%s790_s26] sm:$0xf]  ;;  %v1521_v4 = vld [vmem:[%s790_s26 + $0x4] sm:$0xf] }
  0x51   : > { %1235 = vperm.xlu1 %1866, %v1205_v23   ;;  %1230 = vperm.xlu0 %1865, %v1204_v24   ;;  %v1522_v5 = vsub.f32 %v1518_v1, %v1520_v3  ;;  %v1523_v6 = vsub.f32 %v1519_v2, %v1521_v4  ;;  %v1549_v7 = vld [vmem:[%s776_s17] sm:$0xf]  ;;  %v1550_v8 = vld [vmem:[%s776_s17 + $0x4] sm:$0xf]  ;;  %v903_v24 = vlaneseq }
  0x52   : > { %v1551_v9 = vld [vmem:[%s804_s27] sm:$0xf]  ;;  %v1552_v10 = vld [vmem:[%s804_s27 + $0x4] sm:$0xf] }
  0x53   : > { %v1524_v12 = vand.u32 2147483647, %v1522_v5  ;;  %v1525_v13 = vand.u32 2147483647, %v1523_v6  ;;  %v1553_v14 = vsub.f32 %v1549_v7, %v1551_v9  ;;  %v1554_v15 = vsub.f32 %v1550_v8, %v1552_v10 }
  0x55   : > { %1271 = vperm.xlu1 %1866, %v1209_v25   ;;  %1266 = vperm.xlu0 %1865, %v1208_v26   ;;  %v1555_v16 = vand.u32 2147483647, %v1553_v14  ;;  %v1556_v17 = vand.u32 2147483647, %v1554_v15  ;;  %v1527_v18 = vsel %vm1526_vm0, %v1524_v12, 0.0  ;;  %v1534_v19 = vsel %vm1526_vm0, %v1525_v13, 0.0 }
  0x56   : > { %v1528_v20 = vrot.slane %v1527_v18, 4  ;;  %v1535_v21 = vrot.slane %v1534_v19, 4 }
  0x57   : > { %v1557_v25 = vsel %vm1526_vm0, %v1555_v16, 0.0  ;;  %v1564_v26 = vsel %vm1526_vm0, %v1556_v17, 0.0 }
  0x58   : > { %v1529_v22 = vadd.f32 %v1528_v20, %v1527_v18  ;;  %v1536_v23 = vadd.f32 %v1535_v21, %v1534_v19 }
  0x59   : > { %998 = vperm.xlu1 %1866, %v896_v27   ;;  %993 = vperm.xlu0 %1865, %v895_v28  }
  0x5a   : > { %v1530_v27 = vrot.slane %v1529_v22, 2  ;;  %v1537_v28 = vrot.slane %v1536_v23, 2 }
  0x5d   : > { %1276 = vperm.xlu1 %1866, %v1210_v29   ;;  %1240 = vperm.xlu0 %1865, %v1206_v30   ;;  %v1558_v29 = vrot.slane %v1557_v25, 4  ;;  %v1565_v30 = vrot.slane %v1564_v26, 4 }
  0x61   : > { %1315 = vperm.xlu1 %1866, %v1213_v31   ;;  %1310 = vperm.xlu0 %1865, %v1212_v32   ;;  %v1531_v31 = vadd.f32 %v1530_v27, %v1529_v22  ;;  %v1538_v32 = vadd.f32 %v1537_v28, %v1536_v23 }
  0x65   : > { %1037 = vperm.xlu1 %1866, %v899_v33   ;;  %1003 = vperm.xlu0 %1865, %v897_v34   ;;  %v1559_v33 = vadd.f32 %v1558_v29, %v1557_v25  ;;  %v1566_v34 = vadd.f32 %v1565_v30, %v1564_v26 }
  0x69   : > { %1245 = vperm.xlu1 %1866, %v1207_v35   ;;  %1042 = vperm.xlu0 %1865, %v900_v36   ;;  %v2228_v35 = vshrl.u32 %v903_v24, 7  ;;  %v1532_v36 = vrot.slane %v1531_v31, 1 }
  0x6d   : > { %1320 = vperm.xlu1 %1866, %v1214_v37   ;;  %1281 = vperm.xlu0 %1865, %v1211_v38   ;;  %v1539_v37 = vrot.slane %v1538_v32, 1  ;;  %v1560_v38 = vrot.slane %v1559_v33, 2 }
  0x71   : > { %1359 = vperm.xlu1 %1866, %v1217_v39   ;;  %1354 = vperm.xlu0 %1865, %v1216_v40   ;;  %v1567_v39 = vrot.slane %v1566_v34, 2  ;;  %v1517_v40 = vld [vmem:[#allocation2 + $0x4] sm:$0x3] }
  0x75   : > { %1047 = vperm.xlu1 %1866, %v901_v41   ;;  %1008 = vperm.xlu0 %1865, %v898_v42   ;;  %v1533_v41 = vadd.f32 %v1532_v36, %v1531_v31  ;;  %v1540_v42 = vadd.f32 %v1539_v37, %v1538_v32 }
  0x79   : > { %1364 = vperm.xlu1 %1866, %v1218_v43   ;;  %1325 = vperm.xlu0 %1865, %v1215_v44   ;;  %v2231_v43 = vsub.s32 0, %v2228_v35  ;;  %v1561_v44 = vadd.f32 %v1560_v38, %v1559_v33  ;;  %v985_v33 = vsub.s32 2, %v2228_v35 }
  0x7d   : > { %1077 = vperm.xlu1 %1866, %v1071_v45   ;;  %1052 = vperm.xlu0 %1865, %v902_v46   ;;  %v1568_v45 = vadd.f32 %v1567_v39, %v1566_v34  ;;  %v2234_v46 = vld [vmem:[%s797_s28] sm:$0xf] }
  0x7e   : > { %v986_v37 = vrot.slane %v2234_v46, %v985_v33 }
  0x81   : > { %1369 = vperm.xlu1 %1866, %v1219_v47   ;;  %1082 = vperm.xlu0 %1865, %v1072_v48   ;;  %v2236_v47 = vld [vmem:[%s797_s28 + $0x4] sm:$0xf]  ;;  %v1543_v48 = vsel %vm1195_vm1, %v1540_v42, %v1533_v41 }
  0x82   : > { %v990_v38 = vrot.slane %v2236_v47, %v985_v33 }
  0x85   : > { %1399 = vperm.xlu1 %1866, %v1389_v49   ;;  %1394 = vperm.xlu0 %1865, %v1388_v50   ;;  %v1545_v49 = vadd.f32 %v1543_v48, %v1517_v40  ;;  %v1562_v50 = vrot.slane %v1561_v44, 1 }
  0x87   : > { %1546 = vst [vmem:[#allocation2 + $0x4] sm:$0x3] %v1545_v49 }
  0x89   : > { %1404 = vperm.xlu1 %1866, %v1390_v51   ;;  %1087 = vperm.xlu0 %1865, %v1073_v52   ;;  %v1569_v51 = vrot.slane %v1568_v45, 1  ;;  %v906_v52 = vrot.slane %v2234_v46, %v2231_v43 }
  0x8d   : > { %1409 = vperm.xlu1 %1866, %v1391_v53   ;;  %1092 = vperm.xlu0 %1865, %v1074_v54   ;;  %v910_v53 = vrot.slane %v2236_v47, %v2231_v43  ;;  %v1548_v54 = vld [vmem:[#allocation2 + $0x6] sm:$0x3] }
  0x91   : > { %1138 = vperm.xlu1 %1866, %v1128_v55   ;;  %1133 = vperm.xlu0 %1865, %v1127_v56   ;;  %v1563_v55 = vadd.f32 %v1562_v50, %v1561_v44  ;;  %v1570_v56 = vadd.f32 %v1569_v51, %v1568_v45 }
  0x95   : > { %1455 = vperm.xlu1 %1866, %v1445_v57   ;;  %1450 = vperm.xlu0 %1865, %v1444_v58   ;;  %v1573_v57 = vsel %vm1195_vm1, %v1570_v56, %v1563_v55 }
  0x99   : > { %1460 = vperm.xlu1 %1866, %v1446_v59   ;;  %1143 = vperm.xlu0 %1865, %v1129_v60   ;;  %v2245_v60 = vsub.s32 1, %v2228_v35 }
  0x9b   : > { %v942_v4 = vrot.slane %v2234_v46, %v2245_v60  ;;  %v946_v5 = vrot.slane %v2236_v47, %v2245_v60 }
  0x9d   : > { %1465 = vperm.xlu1 %1866, %v1447_v61   ;;  %1148 = vperm.xlu0 %1865, %v1130_v62   ;;  %v1575_v61 = vadd.f32 %v1573_v57, %v1548_v54  ;;  %v1029_v54 = vsub.s32 3, %v2228_v35 }
  0x9f   : > { %1576 = vst [vmem:[#allocation2 + $0x6] sm:$0x3] %v1575_v61  ;;  %v2268_v57 = vrot.slane %v2234_v46, %v1029_v54 }
  0xa1   : > { %1497 = vperm.xlu1 %1866, %v1494_v63   ;;  %1180 = vperm.xlu0 %1865, %v1177_v0  }
  0xc0   : > { %v924_v58 = vpop.permute.xlu1 %923  ;;  %v914_v59 = vpop.permute.xlu0 %913 }
  0xc1   : > { %v933_v62 = vmul.f32 %v924_v58, %v906_v52  ;;  %v937_v63 = vmul.f32 %v924_v58, %v910_v53  ;;  %v931_v0 = vmul.f32 %v914_v59, %v906_v52  ;;  %v935_v1 = vmul.f32 %v914_v59, %v910_v53 }
  0xc2   : > { %v2271_v58 = vrot.slane %v2236_v47, %v1029_v54 }
  0xc4   : > { %v929_v2 = vpop.permute.xlu1 %928  ;;  %v919_v3 = vpop.permute.xlu0 %918 }
  0xc5   : > { %v934_v6 = vmul.f32 %v929_v2, %v906_v52  ;;  %v938_v7 = vmul.f32 %v929_v2, %v910_v53  ;;  %v932_v8 = vmul.f32 %v919_v3, %v906_v52  ;;  %v936_v9 = vmul.f32 %v919_v3, %v910_v53 }
  0xc8   : > { %v955_v10 = vpop.permute.xlu1 %954  ;;  %v950_v11 = vpop.permute.xlu0 %949 }
  0xc9   : > { %v968_v12 = vmul.f32 %v955_v10, %v942_v4  ;;  %v972_v13 = vmul.f32 %v955_v10, %v946_v5  ;;  %v967_v14 = vmul.f32 %v950_v11, %v942_v4  ;;  %v971_v15 = vmul.f32 %v950_v11, %v946_v5 }
  0xcb   : > { %v976_v16 = vadd.f32 %v968_v12, %v932_v8  ;;  %v980_v17 = vadd.f32 %v972_v13, %v936_v9  ;;  %v975_v18 = vadd.f32 %v967_v14, %v931_v0  ;;  %v979_v19 = vadd.f32 %v971_v15, %v935_v1  ;;  %v1202_v14 = vld [vmem:[%s783_s29] sm:$0xf]  ;;  %v1203_v15 = vld [vmem:[%s783_s29 + $0x4] sm:$0xf] }
  0xcc   : > { %v965_v20 = vpop.permute.xlu1 %964  ;;  %v960_v21 = vpop.permute.xlu0 %959 }
  0xcd   : > { %v970_v22 = vmul.f32 %v965_v20, %v942_v4  ;;  %v974_v23 = vmul.f32 %v965_v20, %v946_v5  ;;  %v969_v25 = vmul.f32 %v960_v21, %v942_v4  ;;  %v973_v26 = vmul.f32 %v960_v21, %v946_v5 }
  0xcf   : > { %v2251_v27 = vadd.f32 %v970_v22, %v934_v6  ;;  %v2253_v28 = vadd.f32 %v974_v23, %v938_v7  ;;  %v977_v29 = vadd.f32 %v969_v25, %v933_v62  ;;  %v981_v30 = vadd.f32 %v973_v26, %v937_v63 }
  0xd0   : > { %v2255_v31 = vpop.permute.xlu1 %1235  ;;  %v2257_v32 = vpop.permute.xlu0 %1230 }
  0xd4   : > { %v1272_v34 = vpop.permute.xlu1 %1271  ;;  %v2260_v36 = vpop.permute.xlu0 %1266 }
  0xd8   : > { %v999_v39 = vpop.permute.xlu1 %998  ;;  %v994_v40 = vpop.permute.xlu0 %993 }
  0xd9   : > { %v1012_v41 = vmul.f32 %v999_v39, %v986_v37  ;;  %v1016_v42 = vmul.f32 %v999_v39, %v990_v38  ;;  %v1011_v44 = vmul.f32 %v994_v40, %v986_v37  ;;  %v1015_v45 = vmul.f32 %v994_v40, %v990_v38 }
  0xdb   : > { %v1020_v48 = vadd.f32 %v1012_v41, %v976_v16  ;;  %v1024_v49 = vadd.f32 %v1016_v42, %v980_v17  ;;  %v1019_v50 = vadd.f32 %v1011_v44, %v975_v18  ;;  %v1023_v51 = vadd.f32 %v1015_v45, %v979_v19 }
  0xdc   : > { %v1277_v52 = vpop.permute.xlu1 %1276  ;;  %v1241_v53 = vpop.permute.xlu0 %1240  ;;  %v1223_v16 = vrot.slane %v1202_v14, %v2231_v43  ;;  %v1227_v17 = vrot.slane %v1203_v15, %v2231_v43  ;;  %v1259_v18 = vrot.slane %v1202_v14, %v2245_v60  ;;  %v1263_v19 = vrot.slane %v1203_v15, %v2245_v60 }
  0xde   : > { %v1249_v60 = vmul.f32 %v2255_v31, %v1223_v16  ;;  %v1285_v44 = vmul.f32 %v1272_v34, %v1259_v18  ;;  %v1289_v45 = vmul.f32 %v1272_v34, %v1263_v19 }
  0xe0   : > { %v1316_v55 = vpop.permute.xlu1 %1315  ;;  %v2265_v56 = vpop.permute.xlu0 %1310 }
  0xe4   : > { %v1038_v59 = vpop.permute.xlu1 %1037  ;;  %v1004_v61 = vpop.permute.xlu0 %1003 }
  0xe5   : > { %v1055_v62 = vmul.f32 %v1038_v59, %v2268_v57  ;;  %v1059_v63 = vmul.f32 %v1038_v59, %v2271_v58  ;;  %v1013_v0 = vmul.f32 %v1004_v61, %v986_v37  ;;  %v1017_v1 = vmul.f32 %v1004_v61, %v990_v38 }
  0xe6   : > { %v1254_v59 = vmul.f32 %v1241_v53, %v1227_v17 }
  0xe7   : > { %v1021_v2 = vadd.f32 %v1013_v0, %v977_v29  ;;  %v1025_v3 = vadd.f32 %v1017_v1, %v981_v30  ;;  %v2275_v4 = vadd.f32 %v1055_v62, %v1019_v50  ;;  %v2277_v5 = vadd.f32 %v1059_v63, %v1023_v51 }
  0xe8   : > { %v2279_v46 = vpop.permute.xlu1 %1245  ;;  %v1043_v6 = vpop.permute.xlu0 %1042  ;;  %v1303_v29 = vrot.slane %v1202_v14, %v985_v33  ;;  %v1307_v30 = vrot.slane %v1203_v15, %v985_v33  ;;  %v1284_v33 = vmul.f32 %v2260_v36, %v1259_v18  ;;  %v1250_v51 = vmul.f32 %v1241_v53, %v1223_v16 }
  0xe9   : > { %v1056_v47 = vmul.f32 %v1043_v6, %v2268_v57  ;;  %v1060_v7 = vmul.f32 %v1043_v6, %v2271_v58  ;;  %v1248_v62 = vmul.f32 %v2257_v32, %v1223_v16  ;;  %v1252_v63 = vmul.f32 %v2257_v32, %v1227_v17 }
  0xea   : > { %v1329_v61 = vmul.f32 %v1316_v55, %v1303_v29  ;;  %v1333_v34 = vmul.f32 %v1316_v55, %v1307_v30  ;;  %v1351_v0 = vrot.slane %v1203_v15, %v1029_v54  ;;  %v1293_v1 = vadd.f32 %v1285_v44, %v1249_v60 }
  0xeb   : > { %v2283_v8 = vadd.f32 %v1056_v47, %v1020_v48  ;;  %v2285_v9 = vadd.f32 %v1060_v7, %v1024_v49  ;;  %v2305_v48 = vrot.slane %v1202_v14, %v1029_v54 }
  0xec   : > { %v1321_v10 = vpop.permute.xlu1 %1320  ;;  %v1282_v11 = vpop.permute.xlu0 %1281 }
  0xed   : > { %v1330_v32 = vmul.f32 %v1321_v10, %v1303_v29  ;;  %v1334_v54 = vmul.f32 %v1321_v10, %v1307_v30  ;;  %v1255_v10 = vmul.f32 %v2279_v46, %v1227_v17 }
  0xf0   : > { %v2287_v12 = vpop.permute.xlu1 %1359  ;;  %v2289_v13 = vpop.permute.xlu0 %1354 }
  0xf4   : > { %v1048_v20 = vpop.permute.xlu1 %1047  ;;  %v1009_v21 = vpop.permute.xlu0 %1008 }
  0xf5   : > { %v1057_v22 = vmul.f32 %v1048_v20, %v2268_v57  ;;  %v1061_v23 = vmul.f32 %v1048_v20, %v2271_v58  ;;  %v1014_v25 = vmul.f32 %v1009_v21, %v986_v37  ;;  %v1018_v26 = vmul.f32 %v1009_v21, %v990_v38 }
  0xf6   : > { %v1253_v37 = vmul.f32 %v2255_v31, %v1227_v17  ;;  %v1286_v38 = vmul.f32 %v1277_v52, %v1259_v18  ;;  %v1332_v31 = vmul.f32 %v2265_v56, %v1307_v30  ;;  %v1337_v21 = vadd.f32 %v1329_v61, %v1293_v1 }
  0xf7   : > { %v1022_v39 = vadd.f32 %v1014_v25, %v2251_v27  ;;  %v1026_v40 = vadd.f32 %v1018_v26, %v2253_v28  ;;  %v2300_v41 = vadd.f32 %v1057_v22, %v1021_v2  ;;  %v2302_v42 = vadd.f32 %v1061_v23, %v1025_v3 }
  0xf8   : > { %v1365_v49 = vpop.permute.xlu1 %1364  ;;  %v1326_v50 = vpop.permute.xlu0 %1325  ;;  %v1288_v27 = vmul.f32 %v2260_v36, %v1263_v19  ;;  %v1290_v28 = vmul.f32 %v1277_v52, %v1263_v19  ;;  %v1297_v2 = vadd.f32 %v1289_v45, %v1253_v37  ;;  %v1328_v3 = vmul.f32 %v2265_v56, %v1303_v29 }
  0xf9   : > { %v1292_v36 = vadd.f32 %v1284_v33, %v1248_v62  ;;  %v1294_v14 = vadd.f32 %v1286_v38, %v1250_v51  ;;  %v1287_v25 = vmul.f32 %v1282_v11, %v1259_v18  ;;  %v1291_v26 = vmul.f32 %v1282_v11, %v1263_v19 }
  0xfa   : > { %v1296_v7 = vadd.f32 %v1288_v27, %v1252_v63  ;;  %v1298_v20 = vadd.f32 %v1290_v28, %v1254_v59  ;;  %v1341_v55 = vadd.f32 %v1333_v34, %v1297_v2  ;;  %v1377_v45 = vmul.f32 %v2287_v12, %v1351_v0 }
  0xfb   : > { %v1336_v23 = vadd.f32 %v1328_v3, %v1292_v36  ;;  %v1376_v18 = vmul.f32 %v2289_v13, %v1351_v0  ;;  %v1331_v19 = vmul.f32 %v1326_v50, %v1303_v29  ;;  %v1335_v33 = vmul.f32 %v1326_v50, %v1307_v30 }
  0xfc   : > { %v1078_v6 = vpop.permute.xlu1 %1077  ;;  %v1053_v47 = vpop.permute.xlu0 %1052  ;;  %v1340_v56 = vadd.f32 %v1332_v31, %v1296_v7  ;;  %v1342_v11 = vadd.f32 %v1334_v54, %v1298_v20  ;;  %v1299_v38 = vadd.f32 %v1291_v26, %v1255_v10  ;;  %v1374_v28 = vmul.f32 %v1365_v49, %v2305_v48 }
  0xfd   : > { %v1058_v52 = vmul.f32 %v1053_v47, %v2268_v57  ;;  %v1062_v53 = vmul.f32 %v1053_v47, %v2271_v58  ;;  %v1251_v57 = vmul.f32 %v2279_v46, %v1223_v16  ;;  %v1373_v58 = vmul.f32 %v2287_v12, %v2305_v48 }
  0xfe   : > { %v1095_v37 = vadd.f32 %v1078_v6, %v2275_v4  ;;  %v1099_v16 = vadd.f32 %v1078_v6, %v2277_v5  ;;  %v1378_v12 = vmul.f32 %v1365_v49, %v1351_v0  ;;  %v1385_v61 = vadd.f32 %v1377_v45, %v1341_v55 }
  0xff   : > { %v2316_v15 = vadd.f32 %v1058_v52, %v1022_v39  ;;  %v2318_v22 = vadd.f32 %v1062_v53, %v1026_v40  ;;  %v1338_v39 = vadd.f32 %v1330_v32, %v1294_v14  ;;  %v1372_v40 = vmul.f32 %v2289_v13, %v2305_v48 }
 0x100   : > { %v1370_v60 = vpop.permute.xlu1 %1369  ;;  %v1083_v44 = vpop.permute.xlu0 %1082  ;;  %v1295_v27 = vadd.f32 %v1287_v25, %v1251_v57  ;;  %v1111_v59 = vmul.f32 0.2, %v1095_v37  ;;  %v1381_v17 = vadd.f32 %v1373_v58, %v1337_v21  ;;  %v1384_v63 = vadd.f32 %v1376_v18, %v1340_v56 }
 0x101   : > { %v1096_v46 = vadd.f32 %v1083_v44, %v2283_v8  ;;  %v1100_v62 = vadd.f32 %v1083_v44, %v2285_v9  ;;  %v1380_v13 = vadd.f32 %v1372_v40, %v1336_v23  ;;  %vm1103_vm2 = vcmp.gt.f32.partialorder %v1095_v37, 0.0 }
 0x102   : > { %v1339_v29 = vadd.f32 %v1331_v19, %v1295_v27  ;;  %v1343_v30 = vadd.f32 %v1335_v33, %v1299_v38  ;;  %v1115_v5 = vmul.f32 0.2, %v1099_v16  ;;  %v1375_v34 = vmul.f32 %v1370_v60, %v2305_v48 }
 0x103   : > { %v1382_v49 = vadd.f32 %v1374_v28, %v1338_v39  ;;  %v1386_v2 = vadd.f32 %v1378_v12, %v1342_v11  ;;  %vm1107_vm3 = vcmp.gt.f32.partialorder %v1099_v16, 0.0  ;;  %v1379_v31 = vmul.f32 %v1370_v60, %v1351_v0 }
 0x104   : > { %v1400_v51 = vpop.permute.xlu1 %1399  ;;  %v1395_v4 = vpop.permute.xlu0 %1394  ;;  %v1112_v8 = vmul.f32 0.2, %v1096_v46  ;;  %v1119_v47 = vsel %vm1103_vm2, %v1095_v37, %v1111_v59  ;;  %v1116_v36 = vmul.f32 0.2, %v1100_v62  ;;  %vm1104_vm4 = vcmp.gt.f32.partialorder %v1096_v46, 0.0 }
 0x105   : > { %v1413_v50 = vadd.f32 %v1400_v51, %v1381_v17  ;;  %v1417_v6 = vadd.f32 %v1400_v51, %v1385_v61  ;;  %v1412_v9 = vadd.f32 %v1395_v4, %v1380_v13  ;;  %v1416_v7 = vadd.f32 %v1395_v4, %v1384_v63 }
 0x106   : > { %vm1108_vm5 = vcmp.gt.f32.partialorder %v1100_v62, 0.0  ;;  %v1123_v14 = vsel %vm1107_vm3, %v1099_v16, %v1115_v5  ;;  %v1383_v54 = vadd.f32 %v1375_v34, %v1339_v29  ;;  %v1387_v23 = vadd.f32 %v1379_v31, %v1343_v30 }
 0x107   : > { %v1429_v52 = vmul.f32 0.2, %v1413_v50  ;;  %vm1421_vm6 = vcmp.gt.f32.partialorder %v1413_v50, 0.0  ;;  %v1433_v0 = vmul.f32 0.2, %v1417_v6  ;;  %v1120_v56 = vsel %vm1104_vm4, %v1096_v46, %v1112_v8 }
 0x108   : > { %v1405_v1 = vpop.permute.xlu1 %1404  ;;  %v1088_v3 = vpop.permute.xlu0 %1087  ;;  %v1428_v25 = vmul.f32 0.2, %v1412_v9  ;;  %v1432_v26 = vmul.f32 0.2, %v1416_v7  ;;  %v1124_v60 = vsel %vm1108_vm5, %v1100_v62, %v1116_v36  ;;  %vm1425_vm7 = vcmp.gt.f32.partialorder %v1417_v6, 0.0 }
 0x109   : > { %v1414_v53 = vadd.f32 %v1405_v1, %v1382_v49  ;;  %v1418_v20 = vadd.f32 %v1405_v1, %v1386_v2  ;;  %v1097_v48 = vadd.f32 %v1088_v3, %v2300_v41  ;;  %v1101_v21 = vadd.f32 %v1088_v3, %v2302_v42 }
 0x10a   : > { %v1437_v57 = vsel %vm1421_vm6, %v1413_v50, %v1429_v52  ;;  %vm1420_vm8 = vcmp.gt.f32.partialorder %v1412_v9, 0.0  ;;  %vm1424_vm9 = vcmp.gt.f32.partialorder %v1416_v7, 0.0  ;;  %v1441_v12 = vsel %vm1425_vm7, %v1417_v6, %v1433_v0 }
 0x10b   : > { %v1430_v44 = vmul.f32 0.2, %v1414_v53  ;;  %v1434_v58 = vmul.f32 0.2, %v1418_v20  ;;  %v1113_v45 = vmul.f32 0.2, %v1097_v48  ;;  %v1436_v4 = vsel %vm1420_vm8, %v1412_v9, %v1428_v25 }
 0x10c   : > { %v1410_v32 = vpop.permute.xlu1 %1409  ;;  %v1093_v55 = vpop.permute.xlu0 %1092  ;;  %v1117_v41 = vmul.f32 0.2, %v1101_v21  ;;  %vm1422_vm10 = vcmp.gt.f32.partialorder %v1414_v53, 0.0  ;;  %vm1426_vm11 = vcmp.gt.f32.partialorder %v1418_v20, 0.0  ;;  %vm1105_vm12 = vcmp.gt.f32.partialorder %v1097_v48, 0.0 }
 0x10d   : > { %v1415_v37 = vadd.f32 %v1410_v32, %v1383_v54  ;;  %v1419_v19 = vadd.f32 %v1410_v32, %v1387_v23  ;;  %v1098_v33 = vadd.f32 %v1093_v55, %v2316_v15  ;;  %v1102_v16 = vadd.f32 %v1093_v55, %v2318_v22 }
 0x10e   : > { %v1440_v59 = vsel %vm1424_vm9, %v1416_v7, %v1432_v26  ;;  %vm1109_vm13 = vcmp.gt.f32.partialorder %v1101_v21, 0.0  ;;  %v1438_v17 = vsel %vm1422_vm10, %v1414_v53, %v1430_v44  ;;  %v1442_v61 = vsel %vm1426_vm11, %v1418_v20, %v1434_v58 }
 0x10f   : > { %v1431_v46 = vmul.f32 0.2, %v1415_v37  ;;  %v1121_v62 = vsel %vm1105_vm12, %v1097_v48, %v1113_v45  ;;  %v1435_v22 = vmul.f32 0.2, %v1419_v19  ;;  %v1114_v30 = vmul.f32 0.2, %v1098_v33 }
 0x110   : > { %v1139_v42 = vpop.permute.xlu1 %1138  ;;  %v1134_v10 = vpop.permute.xlu0 %1133  ;;  %v1118_v5 = vmul.f32 0.2, %v1102_v16  ;;  %v1125_v50 = vsel %vm1109_vm13, %v1101_v21, %v1117_v41  ;;  %vm1423_vm14 = vcmp.gt.f32.partialorder %v1415_v37, 0.0  ;;  %vm1427_vm15 = vcmp.gt.f32.partialorder %v1419_v19, 0.0 }
 0x111   : > { %v1152_v39 = vmul.f32 %v1139_v42, %v1120_v56  ;;  %v1156_v40 = vmul.f32 %v1139_v42, %v1124_v60  ;;  %v1151_v18 = vmul.f32 %v1134_v10, %v1119_v47  ;;  %v1155_v11 = vmul.f32 %v1134_v10, %v1123_v14 }
 0x112   : > { %vm1106_vm0 = vcmp.gt.f32.partialorder %v1098_v33, 0.0  ;;  %vm1110_vm2 = vcmp.gt.f32.partialorder %v1102_v16, 0.0  ;;  %v1439_v9 = vsel %vm1423_vm14, %v1415_v37, %v1431_v46  ;;  %v1443_v7 = vsel %vm1427_vm15, %v1419_v19, %v1435_v22 }
 0x113   : > { %v1159_v27 = vadd.f32 %v1152_v39, %v1151_v18  ;;  %v1168_v38 = vadd.f32 %v1156_v40, %v1155_v11  ;;  %v1122_v48 = vsel %vm1106_vm0, %v1098_v33, %v1114_v30  ;;  %v1126_v21 = vsel %vm1110_vm2, %v1102_v16, %v1118_v5 }
 0x114   : > { %v1456_v28 = vpop.permute.xlu1 %1455  ;;  %v1451_v51 = vpop.permute.xlu0 %1450  ;;  %vm1584_vm3 = vcmask 1041408   ;;  %vm1613_vm4 = vcmask 9216  }
 0x115   : > { %v1469_v13 = vmul.f32 %v1456_v28, %v1437_v57  ;;  %v1473_v63 = vmul.f32 %v1456_v28, %v1441_v12  ;;  %v1468_v15 = vmul.f32 %v1451_v51, %v1436_v4  ;;  %v1472_v29 = vmul.f32 %v1451_v51, %v1440_v59 }
 0x117   : > { %v1476_v8 = vadd.f32 %v1469_v13, %v1468_v15  ;;  %v1485_v6 = vadd.f32 %v1473_v63, %v1472_v29 }
 0x118   : > { %v1461_v34 = vpop.permute.xlu1 %1460  ;;  %v1144_v1 = vpop.permute.xlu0 %1143 }
 0x119   : > { %v1470_v49 = vmul.f32 %v1461_v34, %v1438_v17  ;;  %v1474_v2 = vmul.f32 %v1461_v34, %v1442_v61  ;;  %v1153_v3 = vmul.f32 %v1144_v1, %v1121_v62  ;;  %v1157_v31 = vmul.f32 %v1144_v1, %v1125_v50  ;;  %v1201_v1 = vld [vmem:[#allocation2 + $0x2] sm:$0x3] }
 0x11b   : > { %v1160_v47 = vadd.f32 %v1159_v27, %v1153_v3  ;;  %v1169_v36 = vadd.f32 %v1168_v38, %v1157_v31  ;;  %v1477_v52 = vadd.f32 %v1476_v8, %v1470_v49  ;;  %v1486_v53 = vadd.f32 %v1485_v6, %v1474_v2  ;;  %v884_v3 = vld [vmem:[#allocation2] sm:$0x3] }
 0x11c   : > { %v1466_v14 = vpop.permute.xlu1 %1465  ;;  %v1149_v20 = vpop.permute.xlu0 %1148 }
 0x11d   : > { %v1471_v32 = vmul.f32 %v1466_v14, %v1439_v9  ;;  %v1475_v55 = vmul.f32 %v1466_v14, %v1443_v7  ;;  %v1154_v0 = vmul.f32 %v1149_v20, %v1122_v48  ;;  %v1158_v54 = vmul.f32 %v1149_v20, %v1126_v21  ;;  %v1583_v48 = vld [vmem:[#allocation2 + $0x6] sm:$0x3] }
 0x11e   : > { %v1594_v21 = vsel %vm1584_vm3, %v1583_v48, 0.0 }
 0x11f   : > { %v1478_v23 = vadd.f32 %v1477_v52, %v1471_v32  ;;  %v1487_v56 = vadd.f32 %v1486_v53, %v1475_v55  ;;  %v1161_v25 = vadd.f32 %v1160_v47, %v1154_v0  ;;  %v1170_v26 = vadd.f32 %v1169_v36, %v1158_v54  ;;  %v1582_v52 = vld [vmem:[#allocation2 + $0x4] sm:$0x3] }
 0x120   : > { %v1498_v11 = vpop.permute.xlu1 %1497  ;;  %v1181_v16 = vpop.permute.xlu0 %1180  ;;  %v1591_v20 = vsel %vm1584_vm3, %v1582_v52, 0.0  ;;  %v1602_v32 = vand.u32 127, %v903_v24 }
 0x121   : > { %v1479_v60 = vrot.slane %v1478_v23, 4  ;;  %v1488_v44 = vrot.slane %v1487_v56, 4  ;;  %v1162_v57 = vrot.slane %v1161_v25, 4  ;;  %v1171_v58 = vrot.slane %v1170_v26, 4 }
 0x122   : > { %v1503_v59 = vrot.slane %v1498_v11, %v2231_v43  ;;  %v1186_v46 = vrot.slane %v1181_v16, %v2231_v43  ;;  %v1605_v55 = vsub.s32 %v1602_v32, %v2228_v35 }
 0x123   : > { %v1480_v45 = vadd.f32 %v1479_v60, %v1478_v23  ;;  %v1489_v41 = vadd.f32 %v1488_v44, %v1487_v56  ;;  %v1163_v37 = vadd.f32 %v1162_v57, %v1161_v25  ;;  %v1172_v42 = vadd.f32 %v1171_v58, %v1170_v26 }
 0x125   : > { %v1481_v10 = vrot.slane %v1480_v45, 2  ;;  %v1490_v39 = vrot.slane %v1489_v41, 2  ;;  %v1164_v40 = vrot.slane %v1163_v37, 2  ;;  %v1173_v18 = vrot.slane %v1172_v42, 2 }
 0x127   : > { %v1482_v19 = vadd.f32 %v1481_v10, %v1480_v45  ;;  %v1491_v33 = vadd.f32 %v1490_v39, %v1489_v41  ;;  %v1165_v27 = vadd.f32 %v1164_v40, %v1163_v37  ;;  %v1174_v38 = vadd.f32 %v1173_v18, %v1172_v42 }
 0x129   : > { %v1483_v28 = vrot.slane %v1482_v19, 1  ;;  %v1492_v12 = vrot.slane %v1491_v33, 1  ;;  %v1166_v51 = vrot.slane %v1165_v27, 1  ;;  %v1175_v4 = vrot.slane %v1174_v38, 1 }
 0x12b   : > { %v1484_v17 = vadd.f32 %v1483_v28, %v1482_v19  ;;  %v1493_v61 = vadd.f32 %v1492_v12, %v1491_v33  ;;  %v1167_v62 = vadd.f32 %v1166_v51, %v1165_v27  ;;  %v1176_v13 = vadd.f32 %v1175_v4, %v1174_v38 }
 0x12d   : > { %v1504_v63 = vadd.f32 %v1503_v59, %v1484_v17  ;;  %v1505_v15 = vadd.f32 %v1503_v59, %v1493_v61  ;;  %v1187_v29 = vadd.f32 %v1186_v46, %v1167_v62  ;;  %v1188_v22 = vadd.f32 %v1186_v46, %v1176_v13 }
 0x12f   : > { %v1819_v30 = vadd.f32 -1.0, %v1504_v63  ;;  %v1820_v5 = vadd.f32 -1.0, %v1505_v15  ;;  %v1817_v50 = vadd.f32 -1.0, %v1187_v29  ;;  %v1818_v34 = vadd.f32 -1.0, %v1188_v22 }
 0x131   : > { %v1508_v49 = vmul.f32 %v1819_v30, %v1819_v30  ;;  %v1509_v2 = vmul.f32 %v1820_v5, %v1820_v5  ;;  %v1191_v31 = vmul.f32 %v1817_v50, %v1817_v50  ;;  %v1192_v8 = vmul.f32 %v1818_v34, %v1818_v34 }
 0x133   : > { %v1512_v43 = vsel %vm1195_vm1, %v1509_v2, %v1508_v49  ;;  %v1196_v6 = vsel %vm1195_vm1, %v1192_v8, %v1191_v31 }
 0x134   : > { %v1514_v47 = vadd.f32 %v1512_v43, %v1201_v1  ;;  %v1198_v36 = vadd.f32 %v1196_v6, %v884_v3 }
 0x136   : > { %1515 = vst [vmem:[#allocation2 + $0x2] sm:$0x3] %v1514_v47  ;;  %1199 = vst [vmem:[#allocation2] sm:$0x3] %v1198_v36 }
 0x13d   : > { %v1580_v9 = vld [vmem:[#allocation2] sm:$0x3]  ;;  %v1581_v7 = vld [vmem:[#allocation2 + $0x2] sm:$0x3] }
 0x13e   : > { %v1585_v53 = vsel %vm1584_vm3, %v1580_v9, 0.0  ;;  %v1588_v14 = vsel %vm1584_vm3, %v1581_v7, 0.0 }
 0x13f   : > { %1586 = vadd.xlane.f32.xlu0 %v1585_v53  ;;  %1589 = vadd.xlane.f32.xlu1 %v1588_v14 }
 0x143   : > { %1592 = vadd.xlane.f32.xlu0 %v1591_v20 }
 0x147   : > { %1595 = vadd.xlane.f32.xlu0 %v1594_v21 }
 0x1cc   : > { %v1587_v0 = vpop.xlane.xlu0 %1586  ;;  %v1590_v54 = vpop.xlane.xlu1 %1589 }
 0x1cd   : > { %v1597_v23 = vmul.f32 0.00390625, %v1587_v0  ;;  %v1598_v56 = vmul.f32 0.00390625, %v1590_v54 }
 0x1cf   : > { %v1606_v25 = vrot.slane %v1597_v23, %v1605_v55  ;;  %v1610_v26 = vrot.slane %v1598_v56, %v1605_v55 }
 0x1d0   : > { %v1593_v60 = vpop.xlane.xlu0 %1592 }
 0x1d1   : > { %v1611_v44 = vsel %vm1195_vm1, %v1610_v26, %v1606_v25  ;;  %v1615_v24 = vmul.f32 0.0009765625, %v1593_v60 }
 0x1d2   : > { %1614 = vst.msk [vmem:[%s875_s16] sm:$0x3] %vm1613_vm4, %v1611_v44 }
 0x1d3   : > { %v1622_v35 = vrot.slane %v1615_v24, %v1605_v55 }
 0x1d4   : > { %v1596_v57 = vpop.xlane.xlu0 %1595 }
 0x1d5   : > { %v1616_v58 = vmul.f32 0.0009765625, %v1596_v57 }
 0x1d7   : > { %v1626_v45 = vrot.slane %v1616_v58, %v1605_v55 }
 0x1d9   : > { %v1627_v41 = vsel %vm1195_vm1, %v1626_v45, %v1622_v35 }
 0x1da   : > { %1629 = vst.msk [vmem:[%s875_s16 + $0x2] sm:$0x3] %vm1613_vm4, %v1627_v41 }
 0x1db PF: > { %s28_s21 = sadd.s32 1, %s1905_s21   ;;  %s2390_s19 = sld [smem:[#allocation12_spill]] }
 0x1dc   : > { %p25_p10 = scmp.ge.s32.totalorder %s28_s21, 4   ;;  %s2391_s9 = sld [smem:[#allocation11_spill]] }
 0x1dd   : > { %s2392_s17 = smov %s1893_s18 }
 0x1de   :  { %27 = sbr.rel (!%p25_p10) target bundleno = 6 (0x6), region = 408 }
 0x1e1   : > { %s2393_s18 = smov %s2390_s19  ;;  %s2394_s19 = smov %s1901_s20 }
 0x1e2   : > { %s2395_s20 = smov %s2391_s9 }

</bundles_post_ra>
